<compile_context>
chip_gen: v6e
topology: v6e:2x2x1
jax: 0.10.0
libtpu: 0.0.40
codegen_flags: <defaults>
</compile_context>

<pallas_src>
import math
from functools import partial

import jax
import jax.numpy as jnp
from jax.experimental import pallas as pl
from jax.experimental.pallas import tpu as pltpu


def _mha_kernel(q_ref, k_ref, v_ref, wq_ref, bq_ref, wkv_ref, bkv_ref,
                wo_ref, bo_ref, o_ref,
                qproj_ref, m_ref, l_ref, acc_ref,
                *, num_heads, head_dim):
    f32, bf16 = jnp.float32, jnp.bfloat16
    blk_b, blk_q, E = q_ref.shape
    blk_kv = k_ref.shape[1]
    rq = blk_b * blk_q
    rk = blk_b * blk_kv

    kv_i = pl.program_id(2)
    n_kv = pl.num_programs(2)

    # --- First KV step for this (batch, query) block: project + scale Q once
    # (the 1/sqrt(head_dim) scale is pre-folded into wq/bq by the wrapper) and
    # reset the online-softmax state. ---
    @pl.when(kv_i == 0)
    def _init():
        xq = q_ref[...].reshape(rq, E)
        qp = jnp.dot(xq, wq_ref[...], preferred_element_type=f32) + bq_ref[...]
        qproj_ref[...] = qp.reshape(blk_b, blk_q, E).astype(bf16)
        m_ref[...] = jnp.full(m_ref.shape, -jnp.inf, f32)
        l_ref[...] = jnp.zeros(l_ref.shape, f32)
        acc_ref[...] = jnp.zeros(acc_ref.shape, f32)

    # --- Project this KV block: head-fused (R, E) @ (E, E) MXU matmuls with a
    # single fused bias add each, bf16 operands / f32 accumulation. ---
    kp = (jnp.dot(k_ref[...].reshape(rk, E), wkv_ref[0],
                  preferred_element_type=f32) + bkv_ref[0])
    vp = (jnp.dot(v_ref[...].reshape(rk, E), wkv_ref[1],
                  preferred_element_type=f32) + bkv_ref[1])
    k3 = kp.reshape(blk_b, blk_kv, E).astype(bf16)
    v3 = vp.reshape(blk_b, blk_kv, E).astype(bf16)
    q3 = qproj_ref[...]

    # --- Online softmax per head; heads are static lane slices of E (no
    # transposes / relayouts; per-head matmuls batch over blk_b). ---
    for h in range(num_heads):
        sl = slice(h * head_dim, (h + 1) * head_dim)
        qh, kh, vh = q3[:, :, sl], k3[:, :, sl], v3[:, :, sl]

        # (blk_b, blk_q, blk_kv) scores; contract over head_dim, no K transpose.
        s = jax.lax.dot_general(
            qh, kh, dimension_numbers=(((2,), (2,)), ((0,), (0,))),
            preferred_element_type=f32)

        m_prev = m_ref[h]                                    # (blk_b, blk_q, 1)
        m_new = jnp.maximum(m_prev, jnp.max(s, axis=-1, keepdims=True))
        alpha = jnp.exp(m_prev - m_new)
        p = jnp.exp(s - m_new)
        l_ref[h] = alpha * l_ref[h] + jnp.sum(p, axis=-1, keepdims=True)
        m_ref[h] = m_new

        pv = jax.lax.dot_general(
            p.astype(bf16), vh,
            dimension_numbers=(((2,), (1,)), ((0,), (0,))),
            preferred_element_type=f32)                  # (blk_b, blk_q, head_dim)
        acc_ref[:, :, sl] = alpha * acc_ref[:, :, sl] + pv

    # --- Last KV step: normalize each head in place (EUP reciprocal), then a
    # single wide output projection (no concat, no extra ctx temporary). ---
    @pl.when(kv_i == n_kv - 1)
    def _finalize():
        for h in range(num_heads):
            sl = slice(h * head_dim, (h + 1) * head_dim)
            inv_l = pl.reciprocal(l_ref[h], approx=True)
            acc_ref[:, :, sl] = acc_ref[:, :, sl] * inv_l
        ctx = acc_ref[...].reshape(rq, E).astype(bf16)
        out = jnp.dot(ctx, wo_ref[...], preferred_element_type=f32) + bo_ref[...]
        o_ref[...] = out.reshape(blk_b, blk_q, E).astype(o_ref.dtype)
    # TODO(synk): query_mask / key_mask / mask arguments of the PyTorch module
    # are not implemented (mask=None path only).


def _round_up(x, m):
    return (x + m - 1) // m * m


def _vmem_estimate(blk_b, blk_q, blk_kv, E, num_heads, out_bytes):
    """Rough per-grid-step VMEM footprint in bytes: double-buffered activation
    blocks, single-copy weights, scratch, plus in-kernel temporaries."""
    act = 2 * blk_b * blk_q * E * 2               # q block (bf16, 2 buffers)
    act += 2 * 2 * blk_b * blk_kv * E * 2         # k + v blocks
    outb = 2 * blk_b * blk_q * E * out_bytes      # output block
    weights = 4 * E * E * 2 + 4 * E * 4           # wq+wk+wv+wo (bf16) + biases
    scratch = blk_b * blk_q * E * (2 + 4)         # qproj bf16 + acc f32
    scratch += 2 * num_heads * blk_b * _round_up(blk_q, 8) * 128 * 4   # m, l
    temps = 6 * blk_b * blk_q * max(blk_kv, 128) * 4   # scores / exp temporaries
    temps += 2 * blk_b * blk_kv * E * 4                # projected K/V in f32
    return act + outb + weights + scratch + temps


def _seq_block(S, cap):
    divs = [d for d in range(1, S + 1) if S % d == 0 and d <= cap]
    good = [d for d in divs if d == S or d % 8 == 0]
    return max(good or divs or [S])


def _pick_blocks(B, Sq, Skv, E, num_heads, out_bytes,
                 budget=40 * 1024 * 1024, target_rows=512):
    blk_q = _seq_block(Sq, 512)
    blk_kv = _seq_block(Skv, 512)
    # Shrink the sequence tiles first if even blk_b = 1 would bust the budget.
    while _vmem_estimate(1, blk_q, blk_kv, E, num_heads, out_bytes) > budget:
        if blk_kv > 8:
            blk_kv = _seq_block(Skv, max(8, blk_kv // 2))
        elif blk_q > 8:
            blk_q = _seq_block(Sq, max(8, blk_q // 2))
        else:
            break

    # Batch block: keep the (b, s) -> rows reshape tile-aligned, stay inside
    # the VMEM budget, prefer >= 2 parallel grid steps (v7x: 2 TensorCores),
    # then feed the MXU up to `target_rows` projection rows per step.
    if (blk_q % 8 != 0) or (blk_kv % 8 != 0):
        divs_b = [1]
    else:
        divs_b = [d for d in range(1, B + 1) if B % d == 0]
    feasible = [d for d in divs_b
                if _vmem_estimate(d, blk_q, blk_kv, E, num_heads,
                                  out_bytes) <= budget] or [1]
    n_q = Sq // blk_q
    multi = [d for d in feasible if (B // d) * n_q >= 2]
    pool = multi or feasible
    fitting = [d for d in pool if d * blk_q <= target_rows]
    blk_b = max(fitting or [min(pool)])
    return blk_b, blk_q, blk_kv


def multi_head_attention(query, key, value, params, *, num_heads,
                         block_b=None, block_q=None, block_kv=None):
    """MultiHeadAttention forward (mask=None path) as a Pallas TPU kernel.

    params = (wq, bq, wk, bk, wv, bv, wo, bo) with per-head projection weights
    stored input-major: wq/wk/wv are (H, E, head_dim), bq/bk/bv are
    (H, head_dim), wo is (E, E) input-major, bo is (E,). Equivalent to PyTorch
    nn.Linear with weight = W.T.
    """
    B, Sq, E = query.shape
    Bk, Skv, Ek = key.shape
    assert value.shape == key.shape and Bk == B and Ek == E
    assert E % num_heads == 0
    head_dim = E // num_heads
    wq, bq, wk, bk, wv, bv, wo, bo = params

    # Fuse per-head weights across heads: x @ Wq_full == concat_h(x @ wq[h]),
    # and fold the 1/sqrt(head_dim) softmax scale into Wq / bq.
    def fuse_w(w):  # (H, E, head_dim) -> (E, H*head_dim)
        return jnp.transpose(w, (1, 0, 2)).reshape(E, E)

    scale = 1.0 / math.sqrt(head_dim)
    wq_f = (fuse_w(wq).astype(jnp.float32) * scale).astype(jnp.bfloat16)
    bq_f = bq.reshape(1, E).astype(jnp.float32) * scale
    wkv_f = jnp.stack([fuse_w(wk), fuse_w(wv)]).astype(jnp.bfloat16)   # (2,E,E)
    bkv_f = jnp.stack([bk.reshape(1, E), bv.reshape(1, E)]).astype(jnp.float32)
    wo_f = wo.astype(jnp.bfloat16)
    bo_f = bo.reshape(1, E).astype(jnp.float32)

    # bf16 activation DMA (kernel feeds the MXU bf16 anyway); output keeps the
    # caller's dtype.
    q_in = query.astype(jnp.bfloat16)
    k_in = key.astype(jnp.bfloat16)
    v_in = value.astype(jnp.bfloat16)
    out_dtype = query.dtype
    out_bytes = jnp.dtype(out_dtype).itemsize

    auto_b, auto_q, auto_kv = _pick_blocks(B, Sq, Skv, E, num_heads, out_bytes)
    block_b = auto_b if block_b is None else block_b
    block_q = auto_q if block_q is None else block_q
    block_kv = auto_kv if block_kv is None else block_kv
    assert B % block_b == 0 and Sq % block_q == 0 and Skv % block_kv == 0

    grid = (B // block_b, Sq // block_q, Skv // block_kv)
    kernel = partial(_mha_kernel, num_heads=num_heads, head_dim=head_dim)

    q_spec = pl.BlockSpec((block_b, block_q, E), lambda b, qi, ki: (b, qi, 0))
    kv_spec = pl.BlockSpec((block_b, block_kv, E), lambda b, qi, ki: (b, ki, 0))
    o_spec = pl.BlockSpec((block_b, block_q, E), lambda b, qi, ki: (b, qi, 0))
    # Grid-invariant weights/biases: whole array resident in VMEM as a single
    # copy (no per-step double buffering).
    w_spec = pl.BlockSpec(memory_space=pltpu.MemorySpace.VMEM)

    vmem_limit = int(min(
        64 * 1024 * 1024,
        max(32 * 1024 * 1024,
            1.5 * _vmem_estimate(block_b, block_q, block_kv, E, num_heads,
                                 out_bytes))))

    return pl.pallas_call(
        kernel,
        out_shape=jax.ShapeDtypeStruct((B, Sq, E), out_dtype),
        grid_spec=pltpu.PrefetchScalarGridSpec(
            num_scalar_prefetch=0,
            grid=grid,
            in_specs=[q_spec, kv_spec, kv_spec,
                      w_spec, w_spec, w_spec, w_spec, w_spec, w_spec],
            out_specs=o_spec,
            scratch_shapes=[
                pltpu.VMEM((block_b, block_q, E), jnp.bfloat16),            # q proj
                pltpu.VMEM((num_heads, block_b, block_q, 1), jnp.float32),  # run max
                pltpu.VMEM((num_heads, block_b, block_q, 1), jnp.float32),  # run sum
                pltpu.VMEM((block_b, block_q, E), jnp.float32),             # ctx acc
            ]),
        compiler_params=pltpu.CompilerParams(
            dimension_semantics=("parallel", "parallel", "arbitrary"),
            vmem_limit_bytes=vmem_limit),
    )(q_in, k_in, v_in, wq_f, bq_f, wkv_f, bkv_f, wo_f, bo_f)
    # TODO(synk): self-attention fast path (query is key is value) could DMA
    # the activation once and use a single fused (E, 3E) projection; for very
    # long Sq a separate projection kernel would avoid re-projecting K/V per
    # query block.


def _reference(query, key, value, params, *, num_heads):
    """Pure-JAX (f32) mirror of the PyTorch forward (no masks)."""
    head_dim = query.shape[-1] // num_heads
    wq, bq, wk, bk, wv, bv, wo, bo = params
    outs = []
    for h in range(num_heads):
        q = query @ wq[h] + bq[h]
        k = key @ wk[h] + bk[h]
        v = value @ wv[h] + bv[h]
        scores = jnp.einsum("bqd,bkd->bqk", q, k) / math.sqrt(head_dim)
        w = jax.nn.softmax(scores, axis=-1)
        outs.append(jnp.einsum("bqk,bkd->bqd", w, v))
    x = jnp.concatenate(outs, axis=-1)
    return x @ wo + bo


if __name__ == "__main__":
    # Small config: hidden_size=32, num_attention_heads=4, batch=2, seq=8.
    B, S, E, H = 2, 8, 32, 4
    Hd = E // H

    key0 = jax.random.PRNGKey(0)
    ks = jax.random.split(key0, 11)

    def init(k, shape, scale=0.1):
        return (scale * jax.random.normal(k, shape)).astype(jnp.float32)

    query = init(ks[0], (B, S, E), 1.0)
    key_in = init(ks[1], (B, S, E), 1.0)
    value = init(ks[2], (B, S, E), 1.0)

    params = (
        init(ks[3], (H, E, Hd)),   # Wq (input-major, per head)
        init(ks[4], (H, Hd)),      # bq
        init(ks[5], (H, E, Hd)),   # Wk
        init(ks[6], (H, Hd)),      # bk
        init(ks[7], (H, E, Hd)),   # Wv
        init(ks[8], (H, Hd)),      # bv
        init(ks[9], (E, E)),       # Wo (input-major)
        init(ks[10], (E,)),        # bo
    )

    out = multi_head_attention(query, key_in, value, params, num_heads=H)
    out = jax.block_until_ready(out)

    ref = _reference(query, key_in, value, params, num_heads=H)
    assert out.shape == (B, S, E)
    # Tolerance accounts for bf16 MXU operands / bf16 input DMA (f32 accum)
    # and the approximate EUP reciprocal vs the all-f32 reference.
    max_err = float(jnp.max(jnp.abs(out - ref)))
    assert jnp.allclose(out, ref, atol=2e-2, rtol=2e-2), \
        f"mismatch vs reference: max_err={max_err}"

    print("KERNEL_OK")
</pallas_src>

<mosaic_0001>
module attributes {stable_mosaic.version = 11 : i64} {
  func.func @_mha_kernel(%arg0: i32, %arg1: i32, %arg2: i32, %arg3: memref<1x8x32xbf16, #tpu.memory_space<vmem>>, %arg4: memref<1x8x32xbf16, #tpu.memory_space<vmem>>, %arg5: memref<1x8x32xbf16, #tpu.memory_space<vmem>>, %arg6: memref<32x32xbf16, #tpu.memory_space<vmem>>, %arg7: memref<1x32xf32, #tpu.memory_space<vmem>>, %arg8: memref<2x32x32xbf16, #tpu.memory_space<vmem>>, %arg9: memref<2x1x32xf32, #tpu.memory_space<vmem>>, %arg10: memref<32x32xbf16, #tpu.memory_space<vmem>>, %arg11: memref<1x32xf32, #tpu.memory_space<vmem>>, %arg12: memref<1x8x32xf32, #tpu.memory_space<vmem>>, %arg13: memref<1x8x32xbf16, #tpu.memory_space<vmem>>, %arg14: memref<4x1x8x1xf32, #tpu.memory_space<vmem>>, %arg15: memref<4x1x8x1xf32, #tpu.memory_space<vmem>>, %arg16: memref<1x8x32xf32, #tpu.memory_space<vmem>>) attributes {dimension_semantics = [#tpu.dimension_semantics<parallel>, #tpu.dimension_semantics<parallel>, #tpu.dimension_semantics<arbitrary>], iteration_bounds = array<i64: 2, 1, 1>, scalar_prefetch = 0 : i64, scratch_operands = 4 : i64, tpu.core_type = #tpu.core_type<tc>, window_params = [{transform_indices = @transform_0, window_bounds = array<i64: 1, 8, 32>}, {transform_indices = @transform_1, window_bounds = array<i64: 1, 8, 32>}, {transform_indices = @transform_2, window_bounds = array<i64: 1, 8, 32>}, {pipeline_mode = #tpu.pipeline_mode<synchronous>, transform_indices = @transform_3, window_bounds = array<i64: 32, 32>}, {pipeline_mode = #tpu.pipeline_mode<synchronous>, transform_indices = @transform_4, window_bounds = array<i64: 1, 32>}, {pipeline_mode = #tpu.pipeline_mode<synchronous>, transform_indices = @transform_5, window_bounds = array<i64: 2, 32, 32>}, {pipeline_mode = #tpu.pipeline_mode<synchronous>, transform_indices = @transform_6, window_bounds = array<i64: 2, 1, 32>}, {pipeline_mode = #tpu.pipeline_mode<synchronous>, transform_indices = @transform_7, window_bounds = array<i64: 32, 32>}, {pipeline_mode = #tpu.pipeline_mode<synchronous>, transform_indices = @transform_8, window_bounds = array<i64: 1, 32>}, {transform_indices = @transform_9, window_bounds = array<i64: 1, 8, 32>}]} {
    %c0_i32 = arith.constant 0 : i32
    %0 = arith.cmpi eq, %arg2, %c0_i32 : i32
    %1 = arith.extui %0 : i1 to i32
    %c0_i32_0 = arith.constant 0 : i32
    %2 = arith.cmpi ne, %1, %c0_i32_0 : i32
    scf.if %2 {
      %c0_122 = arith.constant 0 : index
      %c0_123 = arith.constant 0 : index
      %c0_124 = arith.constant 0 : index
      %161 = vector.load %arg3[%c0_122, %c0_123, %c0_124] : memref<1x8x32xbf16, #tpu.memory_space<vmem>>, vector<1x8x32xbf16>
      %162 = vector.shape_cast %161 : vector<1x8x32xbf16> to vector<8x32xbf16>
      %c0_125 = arith.constant 0 : index
      %c0_126 = arith.constant 0 : index
      %163 = vector.load %arg6[%c0_125, %c0_126] : memref<32x32xbf16, #tpu.memory_space<vmem>>, vector<32x32xbf16>
      %cst_127 = arith.constant dense<0.000000e+00> : vector<8x32xf32>
      %164 = tpu.matmul %162, %163, %cst_127 {dimension_numbers = #tpu.dot_dimension_numbers<[1], [0], [0], [1], [0, 0, 1, 1], [], []>} : vector<8x32xbf16>, vector<32x32xbf16>, vector<8x32xf32> -> vector<8x32xf32>
      %c0_128 = arith.constant 0 : index
      %c0_129 = arith.constant 0 : index
      %165 = vector.load %arg7[%c0_128, %c0_129] : memref<1x32xf32, #tpu.memory_space<vmem>>, vector<1x32xf32>
      %166 = vector.broadcast %165 : vector<1x32xf32> to vector<8x32xf32>
      %167 = arith.addf %164, %166 : vector<8x32xf32>
      %168 = vector.shape_cast %167 : vector<8x32xf32> to vector<1x8x32xf32>
      %169 = arith.truncf %168 : vector<1x8x32xf32> to vector<1x8x32xbf16>
      %c0_130 = arith.constant 0 : index
      %c0_131 = arith.constant 0 : index
      %c0_132 = arith.constant 0 : index
      %170 = vector.load %arg13[%c0_130, %c0_131, %c0_132] : memref<1x8x32xbf16, #tpu.memory_space<vmem>>, vector<1x8x32xbf16>
      tpu.vector_store %arg13[%c0_130, %c0_131, %c0_132], %169 {strides = array<i32>} : memref<1x8x32xbf16, #tpu.memory_space<vmem>>, vector<1x8x32xbf16>,
      %cst_133 = arith.constant 0xFF800000 : f32
      %171 = vector.broadcast %cst_133 : f32 to vector<4x1x8x1xf32>
      %c0_134 = arith.constant 0 : index
      %c0_135 = arith.constant 0 : index
      %c0_136 = arith.constant 0 : index
      %c0_137 = arith.constant 0 : index
      %172 = vector.load %arg14[%c0_134, %c0_135, %c0_136, %c0_137] : memref<4x1x8x1xf32, #tpu.memory_space<vmem>>, vector<4x1x8x1xf32>
      tpu.vector_store %arg14[%c0_134, %c0_135, %c0_136, %c0_137], %171 {strides = array<i32>} : memref<4x1x8x1xf32, #tpu.memory_space<vmem>>, vector<4x1x8x1xf32>,
      %cst_138 = arith.constant 0.000000e+00 : f32
      %173 = vector.broadcast %cst_138 : f32 to vector<4x1x8x1xf32>
      %c0_139 = arith.constant 0 : index
      %c0_140 = arith.constant 0 : index
      %c0_141 = arith.constant 0 : index
      %c0_142 = arith.constant 0 : index
      %174 = vector.load %arg15[%c0_139, %c0_140, %c0_141, %c0_142] : memref<4x1x8x1xf32, #tpu.memory_space<vmem>>, vector<4x1x8x1xf32>
      tpu.vector_store %arg15[%c0_139, %c0_140, %c0_141, %c0_142], %173 {strides = array<i32>} : memref<4x1x8x1xf32, #tpu.memory_space<vmem>>, vector<4x1x8x1xf32>,
      %cst_143 = arith.constant 0.000000e+00 : f32
      %175 = vector.broadcast %cst_143 : f32 to vector<1x8x32xf32>
      %c0_144 = arith.constant 0 : index
      %c0_145 = arith.constant 0 : index
      %c0_146 = arith.constant 0 : index
      %176 = vector.load %arg16[%c0_144, %c0_145, %c0_146] : memref<1x8x32xf32, #tpu.memory_space<vmem>>, vector<1x8x32xf32>
      tpu.vector_store %arg16[%c0_144, %c0_145, %c0_146], %175 {strides = array<i32>} : memref<1x8x32xf32, #tpu.memory_space<vmem>>, vector<1x8x32xf32>,
    } else {
    }
    %c0 = arith.constant 0 : index
    %c0_1 = arith.constant 0 : index
    %c0_2 = arith.constant 0 : index
    %3 = vector.load %arg4[%c0, %c0_1, %c0_2] : memref<1x8x32xbf16, #tpu.memory_space<vmem>>, vector<1x8x32xbf16>
    %4 = vector.shape_cast %3 : vector<1x8x32xbf16> to vector<8x32xbf16>
    %c0_3 = arith.constant 0 : index
    %c0_4 = arith.constant 0 : index
    %c0_5 = arith.constant 0 : index
    %5 = vector.load %arg8[%c0_3, %c0_4, %c0_5] : memref<2x32x32xbf16, #tpu.memory_space<vmem>>, vector<1x32x32xbf16>
    %6 = vector.shape_cast %5 : vector<1x32x32xbf16> to vector<32x32xbf16>
    %cst = arith.constant dense<0.000000e+00> : vector<8x32xf32>
    %7 = tpu.matmul %4, %6, %cst {dimension_numbers = #tpu.dot_dimension_numbers<[1], [0], [0], [1], [0, 0, 1, 1], [], []>} : vector<8x32xbf16>, vector<32x32xbf16>, vector<8x32xf32> -> vector<8x32xf32>
    %c0_6 = arith.constant 0 : index
    %c0_7 = arith.constant 0 : index
    %c0_8 = arith.constant 0 : index
    %8 = vector.load %arg9[%c0_6, %c0_7, %c0_8] : memref<2x1x32xf32, #tpu.memory_space<vmem>>, vector<1x1x32xf32>
    %9 = vector.shape_cast %8 : vector<1x1x32xf32> to vector<1x32xf32>
    %10 = vector.broadcast %9 : vector<1x32xf32> to vector<8x32xf32>
    %11 = arith.addf %7, %10 : vector<8x32xf32>
    %c0_9 = arith.constant 0 : index
    %c0_10 = arith.constant 0 : index
    %c0_11 = arith.constant 0 : index
    %12 = vector.load %arg5[%c0_9, %c0_10, %c0_11] : memref<1x8x32xbf16, #tpu.memory_space<vmem>>, vector<1x8x32xbf16>
    %13 = vector.shape_cast %12 : vector<1x8x32xbf16> to vector<8x32xbf16>
    %c1 = arith.constant 1 : index
    %c0_12 = arith.constant 0 : index
    %c0_13 = arith.constant 0 : index
    %14 = vector.load %arg8[%c1, %c0_12, %c0_13] : memref<2x32x32xbf16, #tpu.memory_space<vmem>>, vector<1x32x32xbf16>
    %15 = vector.shape_cast %14 : vector<1x32x32xbf16> to vector<32x32xbf16>
    %cst_14 = arith.constant dense<0.000000e+00> : vector<8x32xf32>
    %16 = tpu.matmul %13, %15, %cst_14 {dimension_numbers = #tpu.dot_dimension_numbers<[1], [0], [0], [1], [0, 0, 1, 1], [], []>} : vector<8x32xbf16>, vector<32x32xbf16>, vector<8x32xf32> -> vector<8x32xf32>
    %c1_15 = arith.constant 1 : index
    %c0_16 = arith.constant 0 : index
    %c0_17 = arith.constant 0 : index
    %17 = vector.load %arg9[%c1_15, %c0_16, %c0_17] : memref<2x1x32xf32, #tpu.memory_space<vmem>>, vector<1x1x32xf32>
    %18 = vector.shape_cast %17 : vector<1x1x32xf32> to vector<1x32xf32>
    %19 = vector.broadcast %18 : vector<1x32xf32> to vector<8x32xf32>
    %20 = arith.addf %16, %19 : vector<8x32xf32>
    %21 = vector.shape_cast %11 : vector<8x32xf32> to vector<1x8x32xf32>
    %22 = arith.truncf %21 : vector<1x8x32xf32> to vector<1x8x32xbf16>
    %23 = vector.shape_cast %20 : vector<8x32xf32> to vector<1x8x32xf32>
    %24 = arith.truncf %23 : vector<1x8x32xf32> to vector<1x8x32xbf16>
    %c0_18 = arith.constant 0 : index
    %c0_19 = arith.constant 0 : index
    %c0_20 = arith.constant 0 : index
    %25 = vector.load %arg13[%c0_18, %c0_19, %c0_20] : memref<1x8x32xbf16, #tpu.memory_space<vmem>>, vector<1x8x32xbf16>
    %26 = vector.extract_strided_slice %25 {offsets = [0, 0, 0], sizes = [1, 8, 8], strides = [1, 1, 1]} : vector<1x8x32xbf16> to vector<1x8x8xbf16>
    %27 = vector.extract_strided_slice %22 {offsets = [0, 0, 0], sizes = [1, 8, 8], strides = [1, 1, 1]} : vector<1x8x32xbf16> to vector<1x8x8xbf16>
    %28 = vector.extract_strided_slice %24 {offsets = [0, 0, 0], sizes = [1, 8, 8], strides = [1, 1, 1]} : vector<1x8x32xbf16> to vector<1x8x8xbf16>
    %cst_21 = arith.constant dense<0.000000e+00> : vector<1x8x8xf32>
    %29 = tpu.matmul %26, %27, %cst_21 {dimension_numbers = #tpu.dot_dimension_numbers<[2], [2], [1], [1], [0, 0, 0, 1, 1, 1], [0], [0]>} : vector<1x8x8xbf16>, vector<1x8x8xbf16>, vector<1x8x8xf32> -> vector<1x8x8xf32>
    %c0_22 = arith.constant 0 : index
    %c0_23 = arith.constant 0 : index
    %c0_24 = arith.constant 0 : index
    %c0_25 = arith.constant 0 : index
    %30 = vector.load %arg14[%c0_22, %c0_23, %c0_24, %c0_25] : memref<4x1x8x1xf32, #tpu.memory_space<vmem>>, vector<1x1x8x1xf32>
    %31 = vector.shape_cast %30 : vector<1x1x8x1xf32> to vector<1x8x1xf32>
    %cst_26 = arith.constant dense<0xFF800000> : vector<1x8xf32>
    %32 = vector.multi_reduction <maximumf>, %29, %cst_26 [2] : vector<1x8x8xf32> to vector<1x8xf32>
    %33 = vector.shape_cast %32 : vector<1x8xf32> to vector<1x8x1xf32>
    %34 = arith.maximumf %31, %33 : vector<1x8x1xf32>
    %35 = arith.subf %31, %34 : vector<1x8x1xf32>
    %36 = math.exp %35 : vector<1x8x1xf32>
    %37 = vector.broadcast %34 : vector<1x8x1xf32> to vector<1x8x8xf32>
    %38 = arith.subf %29, %37 : vector<1x8x8xf32>
    %39 = math.exp %38 : vector<1x8x8xf32>
    %c0_27 = arith.constant 0 : index
    %c0_28 = arith.constant 0 : index
    %c0_29 = arith.constant 0 : index
    %c0_30 = arith.constant 0 : index
    %40 = vector.load %arg15[%c0_27, %c0_28, %c0_29, %c0_30] : memref<4x1x8x1xf32, #tpu.memory_space<vmem>>, vector<1x1x8x1xf32>
    %41 = vector.shape_cast %40 : vector<1x1x8x1xf32> to vector<1x8x1xf32>
    %42 = arith.mulf %36, %41 : vector<1x8x1xf32>
    %cst_31 = arith.constant dense<0.000000e+00> : vector<1x8xf32>
    %43 = vector.multi_reduction <add>, %39, %cst_31 [2] : vector<1x8x8xf32> to vector<1x8xf32>
    %44 = vector.shape_cast %43 : vector<1x8xf32> to vector<1x8x1xf32>
    %45 = arith.addf %42, %44 : vector<1x8x1xf32>
    %c0_32 = arith.constant 0 : index
    %c0_33 = arith.constant 0 : index
    %c0_34 = arith.constant 0 : index
    %c0_35 = arith.constant 0 : index
    %46 = vector.load %arg15[%c0_32, %c0_33, %c0_34, %c0_35] : memref<4x1x8x1xf32, #tpu.memory_space<vmem>>, vector<1x1x8x1xf32>
    %47 = vector.shape_cast %46 : vector<1x1x8x1xf32> to vector<1x8x1xf32>
    %48 = vector.shape_cast %45 : vector<1x8x1xf32> to vector<1x1x8x1xf32>
    tpu.vector_store %arg15[%c0_32, %c0_33, %c0_34, %c0_35], %48 {strides = array<i32>} : memref<4x1x8x1xf32, #tpu.memory_space<vmem>>, vector<1x1x8x1xf32>,
    %c0_36 = arith.constant 0 : index
    %c0_37 = arith.constant 0 : index
    %c0_38 = arith.constant 0 : index
    %c0_39 = arith.constant 0 : index
    %49 = vector.load %arg14[%c0_36, %c0_37, %c0_38, %c0_39] : memref<4x1x8x1xf32, #tpu.memory_space<vmem>>, vector<1x1x8x1xf32>
    %50 = vector.shape_cast %49 : vector<1x1x8x1xf32> to vector<1x8x1xf32>
    %51 = vector.shape_cast %34 : vector<1x8x1xf32> to vector<1x1x8x1xf32>
    tpu.vector_store %arg14[%c0_36, %c0_37, %c0_38, %c0_39], %51 {strides = array<i32>} : memref<4x1x8x1xf32, #tpu.memory_space<vmem>>, vector<1x1x8x1xf32>,
    %52 = arith.truncf %39 : vector<1x8x8xf32> to vector<1x8x8xbf16>
    %cst_40 = arith.constant dense<0.000000e+00> : vector<1x8x8xf32>
    %53 = tpu.matmul %52, %28, %cst_40 {dimension_numbers = #tpu.dot_dimension_numbers<[2], [1], [1], [2], [0, 0, 0, 1, 1, 2], [0], [0]>} : vector<1x8x8xbf16>, vector<1x8x8xbf16>, vector<1x8x8xf32> -> vector<1x8x8xf32>
    %c0_41 = arith.constant 0 : index
    %c0_42 = arith.constant 0 : index
    %c0_43 = arith.constant 0 : index
    %54 = vector.load %arg16[%c0_41, %c0_42, %c0_43] : memref<1x8x32xf32, #tpu.memory_space<vmem>>, vector<1x8x8xf32>
    %55 = vector.broadcast %36 : vector<1x8x1xf32> to vector<1x8x8xf32>
    %56 = arith.mulf %55, %54 : vector<1x8x8xf32>
    %57 = arith.addf %56, %53 : vector<1x8x8xf32>
    %c0_44 = arith.constant 0 : index
    %c0_45 = arith.constant 0 : index
    %c0_46 = arith.constant 0 : index
    %58 = vector.load %arg16[%c0_44, %c0_45, %c0_46] : memref<1x8x32xf32, #tpu.memory_space<vmem>>, vector<1x8x8xf32>
    tpu.vector_store %arg16[%c0_44, %c0_45, %c0_46], %57 {strides = array<i32>} : memref<1x8x32xf32, #tpu.memory_space<vmem>>, vector<1x8x8xf32>,
    %59 = vector.extract_strided_slice %25 {offsets = [0, 0, 8], sizes = [1, 8, 8], strides = [1, 1, 1]} : vector<1x8x32xbf16> to vector<1x8x8xbf16>
    %60 = vector.extract_strided_slice %22 {offsets = [0, 0, 8], sizes = [1, 8, 8], strides = [1, 1, 1]} : vector<1x8x32xbf16> to vector<1x8x8xbf16>
    %61 = vector.extract_strided_slice %24 {offsets = [0, 0, 8], sizes = [1, 8, 8], strides = [1, 1, 1]} : vector<1x8x32xbf16> to vector<1x8x8xbf16>
    %cst_47 = arith.constant dense<0.000000e+00> : vector<1x8x8xf32>
    %62 = tpu.matmul %59, %60, %cst_47 {dimension_numbers = #tpu.dot_dimension_numbers<[2], [2], [1], [1], [0, 0, 0, 1, 1, 1], [0], [0]>} : vector<1x8x8xbf16>, vector<1x8x8xbf16>, vector<1x8x8xf32> -> vector<1x8x8xf32>
    %c1_48 = arith.constant 1 : index
    %c0_49 = arith.constant 0 : index
    %c0_50 = arith.constant 0 : index
    %c0_51 = arith.constant 0 : index
    %63 = vector.load %arg14[%c1_48, %c0_49, %c0_50, %c0_51] : memref<4x1x8x1xf32, #tpu.memory_space<vmem>>, vector<1x1x8x1xf32>
    %64 = vector.shape_cast %63 : vector<1x1x8x1xf32> to vector<1x8x1xf32>
    %cst_52 = arith.constant dense<0xFF800000> : vector<1x8xf32>
    %65 = vector.multi_reduction <maximumf>, %62, %cst_52 [2] : vector<1x8x8xf32> to vector<1x8xf32>
    %66 = vector.shape_cast %65 : vector<1x8xf32> to vector<1x8x1xf32>
    %67 = arith.maximumf %64, %66 : vector<1x8x1xf32>
    %68 = arith.subf %64, %67 : vector<1x8x1xf32>
    %69 = math.exp %68 : vector<1x8x1xf32>
    %70 = vector.broadcast %67 : vector<1x8x1xf32> to vector<1x8x8xf32>
    %71 = arith.subf %62, %70 : vector<1x8x8xf32>
    %72 = math.exp %71 : vector<1x8x8xf32>
    %c1_53 = arith.constant 1 : index
    %c0_54 = arith.constant 0 : index
    %c0_55 = arith.constant 0 : index
    %c0_56 = arith.constant 0 : index
    %73 = vector.load %arg15[%c1_53, %c0_54, %c0_55, %c0_56] : memref<4x1x8x1xf32, #tpu.memory_space<vmem>>, vector<1x1x8x1xf32>
    %74 = vector.shape_cast %73 : vector<1x1x8x1xf32> to vector<1x8x1xf32>
    %75 = arith.mulf %69, %74 : vector<1x8x1xf32>
    %cst_57 = arith.constant dense<0.000000e+00> : vector<1x8xf32>
    %76 = vector.multi_reduction <add>, %72, %cst_57 [2] : vector<1x8x8xf32> to vector<1x8xf32>
    %77 = vector.shape_cast %76 : vector<1x8xf32> to vector<1x8x1xf32>
    %78 = arith.addf %75, %77 : vector<1x8x1xf32>
    %c1_58 = arith.constant 1 : index
    %c0_59 = arith.constant 0 : index
    %c0_60 = arith.constant 0 : index
    %c0_61 = arith.constant 0 : index
    %79 = vector.load %arg15[%c1_58, %c0_59, %c0_60, %c0_61] : memref<4x1x8x1xf32, #tpu.memory_space<vmem>>, vector<1x1x8x1xf32>
    %80 = vector.shape_cast %79 : vector<1x1x8x1xf32> to vector<1x8x1xf32>
    %81 = vector.shape_cast %78 : vector<1x8x1xf32> to vector<1x1x8x1xf32>
    tpu.vector_store %arg15[%c1_58, %c0_59, %c0_60, %c0_61], %81 {strides = array<i32>} : memref<4x1x8x1xf32, #tpu.memory_space<vmem>>, vector<1x1x8x1xf32>,
    %c1_62 = arith.constant 1 : index
    %c0_63 = arith.constant 0 : index
    %c0_64 = arith.constant 0 : index
    %c0_65 = arith.constant 0 : index
    %82 = vector.load %arg14[%c1_62, %c0_63, %c0_64, %c0_65] : memref<4x1x8x1xf32, #tpu.memory_space<vmem>>, vector<1x1x8x1xf32>
    %83 = vector.shape_cast %82 : vector<1x1x8x1xf32> to vector<1x8x1xf32>
    %84 = vector.shape_cast %67 : vector<1x8x1xf32> to vector<1x1x8x1xf32>
    tpu.vector_store %arg14[%c1_62, %c0_63, %c0_64, %c0_65], %84 {strides = array<i32>} : memref<4x1x8x1xf32, #tpu.memory_space<vmem>>, vector<1x1x8x1xf32>,
    %85 = arith.truncf %72 : vector<1x8x8xf32> to vector<1x8x8xbf16>
    %cst_66 = arith.constant dense<0.000000e+00> : vector<1x8x8xf32>
    %86 = tpu.matmul %85, %61, %cst_66 {dimension_numbers = #tpu.dot_dimension_numbers<[2], [1], [1], [2], [0, 0, 0, 1, 1, 2], [0], [0]>} : vector<1x8x8xbf16>, vector<1x8x8xbf16>, vector<1x8x8xf32> -> vector<1x8x8xf32>
    %c0_67 = arith.constant 0 : index
    %c0_68 = arith.constant 0 : index
    %c8 = arith.constant 8 : index
    %87 = vector.load %arg16[%c0_67, %c0_68, %c8] : memref<1x8x32xf32, #tpu.memory_space<vmem>>, vector<1x8x8xf32>
    %88 = vector.broadcast %69 : vector<1x8x1xf32> to vector<1x8x8xf32>
    %89 = arith.mulf %88, %87 : vector<1x8x8xf32>
    %90 = arith.addf %89, %86 : vector<1x8x8xf32>
    %c0_69 = arith.constant 0 : index
    %c0_70 = arith.constant 0 : index
    %c8_71 = arith.constant 8 : index
    %91 = vector.load %arg16[%c0_69, %c0_70, %c8_71] : memref<1x8x32xf32, #tpu.memory_space<vmem>>, vector<1x8x8xf32>
    tpu.vector_store %arg16[%c0_69, %c0_70, %c8_71], %90 {strides = array<i32>} : memref<1x8x32xf32, #tpu.memory_space<vmem>>, vector<1x8x8xf32>,
    %92 = vector.extract_strided_slice %25 {offsets = [0, 0, 16], sizes = [1, 8, 8], strides = [1, 1, 1]} : vector<1x8x32xbf16> to vector<1x8x8xbf16>
    %93 = vector.extract_strided_slice %22 {offsets = [0, 0, 16], sizes = [1, 8, 8], strides = [1, 1, 1]} : vector<1x8x32xbf16> to vector<1x8x8xbf16>
    %94 = vector.extract_strided_slice %24 {offsets = [0, 0, 16], sizes = [1, 8, 8], strides = [1, 1, 1]} : vector<1x8x32xbf16> to vector<1x8x8xbf16>
    %cst_72 = arith.constant dense<0.000000e+00> : vector<1x8x8xf32>
    %95 = tpu.matmul %92, %93, %cst_72 {dimension_numbers = #tpu.dot_dimension_numbers<[2], [2], [1], [1], [0, 0, 0, 1, 1, 1], [0], [0]>} : vector<1x8x8xbf16>, vector<1x8x8xbf16>, vector<1x8x8xf32> -> vector<1x8x8xf32>
    %c2 = arith.constant 2 : index
    %c0_73 = arith.constant 0 : index
    %c0_74 = arith.constant 0 : index
    %c0_75 = arith.constant 0 : index
    %96 = vector.load %arg14[%c2, %c0_73, %c0_74, %c0_75] : memref<4x1x8x1xf32, #tpu.memory_space<vmem>>, vector<1x1x8x1xf32>
    %97 = vector.shape_cast %96 : vector<1x1x8x1xf32> to vector<1x8x1xf32>
    %cst_76 = arith.constant dense<0xFF800000> : vector<1x8xf32>
    %98 = vector.multi_reduction <maximumf>, %95, %cst_76 [2] : vector<1x8x8xf32> to vector<1x8xf32>
    %99 = vector.shape_cast %98 : vector<1x8xf32> to vector<1x8x1xf32>
    %100 = arith.maximumf %97, %99 : vector<1x8x1xf32>
    %101 = arith.subf %97, %100 : vector<1x8x1xf32>
    %102 = math.exp %101 : vector<1x8x1xf32>
    %103 = vector.broadcast %100 : vector<1x8x1xf32> to vector<1x8x8xf32>
    %104 = arith.subf %95, %103 : vector<1x8x8xf32>
    %105 = math.exp %104 : vector<1x8x8xf32>
    %c2_77 = arith.constant 2 : index
    %c0_78 = arith.constant 0 : index
    %c0_79 = arith.constant 0 : index
    %c0_80 = arith.constant 0 : index
    %106 = vector.load %arg15[%c2_77, %c0_78, %c0_79, %c0_80] : memref<4x1x8x1xf32, #tpu.memory_space<vmem>>, vector<1x1x8x1xf32>
    %107 = vector.shape_cast %106 : vector<1x1x8x1xf32> to vector<1x8x1xf32>
    %108 = arith.mulf %102, %107 : vector<1x8x1xf32>
    %cst_81 = arith.constant dense<0.000000e+00> : vector<1x8xf32>
    %109 = vector.multi_reduction <add>, %105, %cst_81 [2] : vector<1x8x8xf32> to vector<1x8xf32>
    %110 = vector.shape_cast %109 : vector<1x8xf32> to vector<1x8x1xf32>
    %111 = arith.addf %108, %110 : vector<1x8x1xf32>
    %c2_82 = arith.constant 2 : index
    %c0_83 = arith.constant 0 : index
    %c0_84 = arith.constant 0 : index
    %c0_85 = arith.constant 0 : index
    %112 = vector.load %arg15[%c2_82, %c0_83, %c0_84, %c0_85] : memref<4x1x8x1xf32, #tpu.memory_space<vmem>>, vector<1x1x8x1xf32>
    %113 = vector.shape_cast %112 : vector<1x1x8x1xf32> to vector<1x8x1xf32>
    %114 = vector.shape_cast %111 : vector<1x8x1xf32> to vector<1x1x8x1xf32>
    tpu.vector_store %arg15[%c2_82, %c0_83, %c0_84, %c0_85], %114 {strides = array<i32>} : memref<4x1x8x1xf32, #tpu.memory_space<vmem>>, vector<1x1x8x1xf32>,
    %c2_86 = arith.constant 2 : index
    %c0_87 = arith.constant 0 : index
    %c0_88 = arith.constant 0 : index
    %c0_89 = arith.constant 0 : index
    %115 = vector.load %arg14[%c2_86, %c0_87, %c0_88, %c0_89] : memref<4x1x8x1xf32, #tpu.memory_space<vmem>>, vector<1x1x8x1xf32>
    %116 = vector.shape_cast %115 : vector<1x1x8x1xf32> to vector<1x8x1xf32>
    %117 = vector.shape_cast %100 : vector<1x8x1xf32> to vector<1x1x8x1xf32>
    tpu.vector_store %arg14[%c2_86, %c0_87, %c0_88, %c0_89], %117 {strides = array<i32>} : memref<4x1x8x1xf32, #tpu.memory_space<vmem>>, vector<1x1x8x1xf32>,
    %118 = arith.truncf %105 : vector<1x8x8xf32> to vector<1x8x8xbf16>
    %cst_90 = arith.constant dense<0.000000e+00> : vector<1x8x8xf32>
    %119 = tpu.matmul %118, %94, %cst_90 {dimension_numbers = #tpu.dot_dimension_numbers<[2], [1], [1], [2], [0, 0, 0, 1, 1, 2], [0], [0]>} : vector<1x8x8xbf16>, vector<1x8x8xbf16>, vector<1x8x8xf32> -> vector<1x8x8xf32>
    %c0_91 = arith.constant 0 : index
    %c0_92 = arith.constant 0 : index
    %c16 = arith.constant 16 : index
    %120 = vector.load %arg16[%c0_91, %c0_92, %c16] : memref<1x8x32xf32, #tpu.memory_space<vmem>>, vector<1x8x8xf32>
    %121 = vector.broadcast %102 : vector<1x8x1xf32> to vector<1x8x8xf32>
    %122 = arith.mulf %121, %120 : vector<1x8x8xf32>
    %123 = arith.addf %122, %119 : vector<1x8x8xf32>
    %c0_93 = arith.constant 0 : index
    %c0_94 = arith.constant 0 : index
    %c16_95 = arith.constant 16 : index
    %124 = vector.load %arg16[%c0_93, %c0_94, %c16_95] : memref<1x8x32xf32, #tpu.memory_space<vmem>>, vector<1x8x8xf32>
    tpu.vector_store %arg16[%c0_93, %c0_94, %c16_95], %123 {strides = array<i32>} : memref<1x8x32xf32, #tpu.memory_space<vmem>>, vector<1x8x8xf32>,
    %125 = vector.extract_strided_slice %25 {offsets = [0, 0, 24], sizes = [1, 8, 8], strides = [1, 1, 1]} : vector<1x8x32xbf16> to vector<1x8x8xbf16>
    %126 = vector.extract_strided_slice %22 {offsets = [0, 0, 24], sizes = [1, 8, 8], strides = [1, 1, 1]} : vector<1x8x32xbf16> to vector<1x8x8xbf16>
    %127 = vector.extract_strided_slice %24 {offsets = [0, 0, 24], sizes = [1, 8, 8], strides = [1, 1, 1]} : vector<1x8x32xbf16> to vector<1x8x8xbf16>
    %cst_96 = arith.constant dense<0.000000e+00> : vector<1x8x8xf32>
    %128 = tpu.matmul %125, %126, %cst_96 {dimension_numbers = #tpu.dot_dimension_numbers<[2], [2], [1], [1], [0, 0, 0, 1, 1, 1], [0], [0]>} : vector<1x8x8xbf16>, vector<1x8x8xbf16>, vector<1x8x8xf32> -> vector<1x8x8xf32>
    %c3 = arith.constant 3 : index
    %c0_97 = arith.constant 0 : index
    %c0_98 = arith.constant 0 : index
    %c0_99 = arith.constant 0 : index
    %129 = vector.load %arg14[%c3, %c0_97, %c0_98, %c0_99] : memref<4x1x8x1xf32, #tpu.memory_space<vmem>>, vector<1x1x8x1xf32>
    %130 = vector.shape_cast %129 : vector<1x1x8x1xf32> to vector<1x8x1xf32>
    %cst_100 = arith.constant dense<0xFF800000> : vector<1x8xf32>
    %131 = vector.multi_reduction <maximumf>, %128, %cst_100 [2] : vector<1x8x8xf32> to vector<1x8xf32>
    %132 = vector.shape_cast %131 : vector<1x8xf32> to vector<1x8x1xf32>
    %133 = arith.maximumf %130, %132 : vector<1x8x1xf32>
    %134 = arith.subf %130, %133 : vector<1x8x1xf32>
    %135 = math.exp %134 : vector<1x8x1xf32>
    %136 = vector.broadcast %133 : vector<1x8x1xf32> to vector<1x8x8xf32>
    %137 = arith.subf %128, %136 : vector<1x8x8xf32>
    %138 = math.exp %137 : vector<1x8x8xf32>
    %c3_101 = arith.constant 3 : index
    %c0_102 = arith.constant 0 : index
    %c0_103 = arith.constant 0 : index
    %c0_104 = arith.constant 0 : index
    %139 = vector.load %arg15[%c3_101, %c0_102, %c0_103, %c0_104] : memref<4x1x8x1xf32, #tpu.memory_space<vmem>>, vector<1x1x8x1xf32>
    %140 = vector.shape_cast %139 : vector<1x1x8x1xf32> to vector<1x8x1xf32>
    %141 = arith.mulf %135, %140 : vector<1x8x1xf32>
    %cst_105 = arith.constant dense<0.000000e+00> : vector<1x8xf32>
    %142 = vector.multi_reduction <add>, %138, %cst_105 [2] : vector<1x8x8xf32> to vector<1x8xf32>
    %143 = vector.shape_cast %142 : vector<1x8xf32> to vector<1x8x1xf32>
    %144 = arith.addf %141, %143 : vector<1x8x1xf32>
    %c3_106 = arith.constant 3 : index
    %c0_107 = arith.constant 0 : index
    %c0_108 = arith.constant 0 : index
    %c0_109 = arith.constant 0 : index
    %145 = vector.load %arg15[%c3_106, %c0_107, %c0_108, %c0_109] : memref<4x1x8x1xf32, #tpu.memory_space<vmem>>, vector<1x1x8x1xf32>
    %146 = vector.shape_cast %145 : vector<1x1x8x1xf32> to vector<1x8x1xf32>
    %147 = vector.shape_cast %144 : vector<1x8x1xf32> to vector<1x1x8x1xf32>
    tpu.vector_store %arg15[%c3_106, %c0_107, %c0_108, %c0_109], %147 {strides = array<i32>} : memref<4x1x8x1xf32, #tpu.memory_space<vmem>>, vector<1x1x8x1xf32>,
    %c3_110 = arith.constant 3 : index
    %c0_111 = arith.constant 0 : index
    %c0_112 = arith.constant 0 : index
    %c0_113 = arith.constant 0 : index
    %148 = vector.load %arg14[%c3_110, %c0_111, %c0_112, %c0_113] : memref<4x1x8x1xf32, #tpu.memory_space<vmem>>, vector<1x1x8x1xf32>
    %149 = vector.shape_cast %148 : vector<1x1x8x1xf32> to vector<1x8x1xf32>
    %150 = vector.shape_cast %133 : vector<1x8x1xf32> to vector<1x1x8x1xf32>
    tpu.vector_store %arg14[%c3_110, %c0_111, %c0_112, %c0_113], %150 {strides = array<i32>} : memref<4x1x8x1xf32, #tpu.memory_space<vmem>>, vector<1x1x8x1xf32>,
    %151 = arith.truncf %138 : vector<1x8x8xf32> to vector<1x8x8xbf16>
    %cst_114 = arith.constant dense<0.000000e+00> : vector<1x8x8xf32>
    %152 = tpu.matmul %151, %127, %cst_114 {dimension_numbers = #tpu.dot_dimension_numbers<[2], [1], [1], [2], [0, 0, 0, 1, 1, 2], [0], [0]>} : vector<1x8x8xbf16>, vector<1x8x8xbf16>, vector<1x8x8xf32> -> vector<1x8x8xf32>
    %c0_115 = arith.constant 0 : index
    %c0_116 = arith.constant 0 : index
    %c24 = arith.constant 24 : index
    %153 = vector.load %arg16[%c0_115, %c0_116, %c24] : memref<1x8x32xf32, #tpu.memory_space<vmem>>, vector<1x8x8xf32>
    %154 = vector.broadcast %135 : vector<1x8x1xf32> to vector<1x8x8xf32>
    %155 = arith.mulf %154, %153 : vector<1x8x8xf32>
    %156 = arith.addf %155, %152 : vector<1x8x8xf32>
    %c0_117 = arith.constant 0 : index
    %c0_118 = arith.constant 0 : index
    %c24_119 = arith.constant 24 : index
    %157 = vector.load %arg16[%c0_117, %c0_118, %c24_119] : memref<1x8x32xf32, #tpu.memory_space<vmem>>, vector<1x8x8xf32>
    tpu.vector_store %arg16[%c0_117, %c0_118, %c24_119], %156 {strides = array<i32>} : memref<1x8x32xf32, #tpu.memory_space<vmem>>, vector<1x8x8xf32>,
    %c0_i32_120 = arith.constant 0 : i32
    %158 = arith.cmpi eq, %arg2, %c0_i32_120 : i32
    %159 = arith.extui %158 : i1 to i32
    %c0_i32_121 = arith.constant 0 : i32
    %160 = arith.cmpi ne, %159, %c0_i32_121 : i32
    scf.if %160 {
      %c0_122 = arith.constant 0 : index
      %c0_123 = arith.constant 0 : index
      %c0_124 = arith.constant 0 : index
      %c0_125 = arith.constant 0 : index
      %161 = vector.load %arg15[%c0_122, %c0_123, %c0_124, %c0_125] : memref<4x1x8x1xf32, #tpu.memory_space<vmem>>, vector<1x1x8x1xf32>
      %162 = vector.shape_cast %161 : vector<1x1x8x1xf32> to vector<1x8x1xf32>
      %163 = tpu.reciprocal %162 {approx = true} : vector<1x8x1xf32> -> vector<1x8x1xf32>
      %c0_126 = arith.constant 0 : index
      %c0_127 = arith.constant 0 : index
      %c0_128 = arith.constant 0 : index
      %164 = vector.load %arg16[%c0_126, %c0_127, %c0_128] : memref<1x8x32xf32, #tpu.memory_space<vmem>>, vector<1x8x8xf32>
      %165 = vector.broadcast %163 : vector<1x8x1xf32> to vector<1x8x8xf32>
      %166 = arith.mulf %164, %165 : vector<1x8x8xf32>
      %c0_129 = arith.constant 0 : index
      %c0_130 = arith.constant 0 : index
      %c0_131 = arith.constant 0 : index
      %167 = vector.load %arg16[%c0_129, %c0_130, %c0_131] : memref<1x8x32xf32, #tpu.memory_space<vmem>>, vector<1x8x8xf32>
      tpu.vector_store %arg16[%c0_129, %c0_130, %c0_131], %166 {strides = array<i32>} : memref<1x8x32xf32, #tpu.memory_space<vmem>>, vector<1x8x8xf32>,
      %c1_132 = arith.constant 1 : index
      %c0_133 = arith.constant 0 : index
      %c0_134 = arith.constant 0 : index
      %c0_135 = arith.constant 0 : index
      %168 = vector.load %arg15[%c1_132, %c0_133, %c0_134, %c0_135] : memref<4x1x8x1xf32, #tpu.memory_space<vmem>>, vector<1x1x8x1xf32>
      %169 = vector.shape_cast %168 : vector<1x1x8x1xf32> to vector<1x8x1xf32>
      %170 = tpu.reciprocal %169 {approx = true} : vector<1x8x1xf32> -> vector<1x8x1xf32>
      %c0_136 = arith.constant 0 : index
      %c0_137 = arith.constant 0 : index
      %c8_138 = arith.constant 8 : index
      %171 = vector.load %arg16[%c0_136, %c0_137, %c8_138] : memref<1x8x32xf32, #tpu.memory_space<vmem>>, vector<1x8x8xf32>
      %172 = vector.broadcast %170 : vector<1x8x1xf32> to vector<1x8x8xf32>
      %173 = arith.mulf %171, %172 : vector<1x8x8xf32>
      %c0_139 = arith.constant 0 : index
      %c0_140 = arith.constant 0 : index
      %c8_141 = arith.constant 8 : index
      %174 = vector.load %arg16[%c0_139, %c0_140, %c8_141] : memref<1x8x32xf32, #tpu.memory_space<vmem>>, vector<1x8x8xf32>
      tpu.vector_store %arg16[%c0_139, %c0_140, %c8_141], %173 {strides = array<i32>} : memref<1x8x32xf32, #tpu.memory_space<vmem>>, vector<1x8x8xf32>,
      %c2_142 = arith.constant 2 : index
      %c0_143 = arith.constant 0 : index
      %c0_144 = arith.constant 0 : index
      %c0_145 = arith.constant 0 : index
      %175 = vector.load %arg15[%c2_142, %c0_143, %c0_144, %c0_145] : memref<4x1x8x1xf32, #tpu.memory_space<vmem>>, vector<1x1x8x1xf32>
      %176 = vector.shape_cast %175 : vector<1x1x8x1xf32> to vector<1x8x1xf32>
      %177 = tpu.reciprocal %176 {approx = true} : vector<1x8x1xf32> -> vector<1x8x1xf32>
      %c0_146 = arith.constant 0 : index
      %c0_147 = arith.constant 0 : index
      %c16_148 = arith.constant 16 : index
      %178 = vector.load %arg16[%c0_146, %c0_147, %c16_148] : memref<1x8x32xf32, #tpu.memory_space<vmem>>, vector<1x8x8xf32>
      %179 = vector.broadcast %177 : vector<1x8x1xf32> to vector<1x8x8xf32>
      %180 = arith.mulf %178, %179 : vector<1x8x8xf32>
      %c0_149 = arith.constant 0 : index
      %c0_150 = arith.constant 0 : index
      %c16_151 = arith.constant 16 : index
      %181 = vector.load %arg16[%c0_149, %c0_150, %c16_151] : memref<1x8x32xf32, #tpu.memory_space<vmem>>, vector<1x8x8xf32>
      tpu.vector_store %arg16[%c0_149, %c0_150, %c16_151], %180 {strides = array<i32>} : memref<1x8x32xf32, #tpu.memory_space<vmem>>, vector<1x8x8xf32>,
      %c3_152 = arith.constant 3 : index
      %c0_153 = arith.constant 0 : index
      %c0_154 = arith.constant 0 : index
      %c0_155 = arith.constant 0 : index
      %182 = vector.load %arg15[%c3_152, %c0_153, %c0_154, %c0_155] : memref<4x1x8x1xf32, #tpu.memory_space<vmem>>, vector<1x1x8x1xf32>
      %183 = vector.shape_cast %182 : vector<1x1x8x1xf32> to vector<1x8x1xf32>
      %184 = tpu.reciprocal %183 {approx = true} : vector<1x8x1xf32> -> vector<1x8x1xf32>
      %c0_156 = arith.constant 0 : index
      %c0_157 = arith.constant 0 : index
      %c24_158 = arith.constant 24 : index
      %185 = vector.load %arg16[%c0_156, %c0_157, %c24_158] : memref<1x8x32xf32, #tpu.memory_space<vmem>>, vector<1x8x8xf32>
      %186 = vector.broadcast %184 : vector<1x8x1xf32> to vector<1x8x8xf32>
      %187 = arith.mulf %185, %186 : vector<1x8x8xf32>
      %c0_159 = arith.constant 0 : index
      %c0_160 = arith.constant 0 : index
      %c24_161 = arith.constant 24 : index
      %188 = vector.load %arg16[%c0_159, %c0_160, %c24_161] : memref<1x8x32xf32, #tpu.memory_space<vmem>>, vector<1x8x8xf32>
      tpu.vector_store %arg16[%c0_159, %c0_160, %c24_161], %187 {strides = array<i32>} : memref<1x8x32xf32, #tpu.memory_space<vmem>>, vector<1x8x8xf32>,
      %c0_162 = arith.constant 0 : index
      %c0_163 = arith.constant 0 : index
      %c0_164 = arith.constant 0 : index
      %189 = vector.load %arg16[%c0_162, %c0_163, %c0_164] : memref<1x8x32xf32, #tpu.memory_space<vmem>>, vector<1x8x32xf32>
      %190 = vector.shape_cast %189 : vector<1x8x32xf32> to vector<8x32xf32>
      %191 = arith.truncf %190 : vector<8x32xf32> to vector<8x32xbf16>
      %c0_165 = arith.constant 0 : index
      %c0_166 = arith.constant 0 : index
      %192 = vector.load %arg10[%c0_165, %c0_166] : memref<32x32xbf16, #tpu.memory_space<vmem>>, vector<32x32xbf16>
      %cst_167 = arith.constant dense<0.000000e+00> : vector<8x32xf32>
      %193 = tpu.matmul %191, %192, %cst_167 {dimension_numbers = #tpu.dot_dimension_numbers<[1], [0], [0], [1], [0, 0, 1, 1], [], []>} : vector<8x32xbf16>, vector<32x32xbf16>, vector<8x32xf32> -> vector<8x32xf32>
      %c0_168 = arith.constant 0 : index
      %c0_169 = arith.constant 0 : index
      %194 = vector.load %arg11[%c0_168, %c0_169] : memref<1x32xf32, #tpu.memory_space<vmem>>, vector<1x32xf32>
      %195 = vector.broadcast %194 : vector<1x32xf32> to vector<8x32xf32>
      %196 = arith.addf %193, %195 : vector<8x32xf32>
      %197 = vector.shape_cast %196 : vector<8x32xf32> to vector<1x8x32xf32>
      %c0_170 = arith.constant 0 : index
      %c0_171 = arith.constant 0 : index
      %c0_172 = arith.constant 0 : index
      %198 = vector.load %arg12[%c0_170, %c0_171, %c0_172] : memref<1x8x32xf32, #tpu.memory_space<vmem>>, vector<1x8x32xf32>
      tpu.vector_store %arg12[%c0_170, %c0_171, %c0_172], %197 {strides = array<i32>} : memref<1x8x32xf32, #tpu.memory_space<vmem>>, vector<1x8x32xf32>,
    } else {
    }
    return
  }
  func.func @transform_0(%arg0: i32, %arg1: i32, %arg2: i32) -> (i32, i32, i32) {
    %c0_i32 = arith.constant 0 : i32
    %c0_i32_0 = arith.constant 0 : i32
    return %arg0, %arg1, %c0_i32 : i32, i32, i32
  }
  func.func @transform_1(%arg0: i32, %arg1: i32, %arg2: i32) -> (i32, i32, i32) {
    %c0_i32 = arith.constant 0 : i32
    %c0_i32_0 = arith.constant 0 : i32
    return %arg0, %arg2, %c0_i32 : i32, i32, i32
  }
  func.func @transform_2(%arg0: i32, %arg1: i32, %arg2: i32) -> (i32, i32, i32) {
    %c0_i32 = arith.constant 0 : i32
    %c0_i32_0 = arith.constant 0 : i32
    return %arg0, %arg2, %c0_i32 : i32, i32, i32
  }
  func.func @transform_3(%arg0: i32, %arg1: i32, %arg2: i32) -> (i32, i32) {
    %c0_i32 = arith.constant 0 : i32
    %c0_i32_0 = arith.constant 0 : i32
    %c0_i32_1 = arith.constant 0 : i32
    return %c0_i32, %c0_i32_0 : i32, i32
  }
  func.func @transform_4(%arg0: i32, %arg1: i32, %arg2: i32) -> (i32, i32) {
    %c0_i32 = arith.constant 0 : i32
    %c0_i32_0 = arith.constant 0 : i32
    %c0_i32_1 = arith.constant 0 : i32
    return %c0_i32, %c0_i32_0 : i32, i32
  }
  func.func @transform_5(%arg0: i32, %arg1: i32, %arg2: i32) -> (i32, i32, i32) {
    %c0_i32 = arith.constant 0 : i32
    %c0_i32_0 = arith.constant 0 : i32
    %c0_i32_1 = arith.constant 0 : i32
    %c0_i32_2 = arith.constant 0 : i32
    return %c0_i32, %c0_i32_0, %c0_i32_1 : i32, i32, i32
  }
  func.func @transform_6(%arg0: i32, %arg1: i32, %arg2: i32) -> (i32, i32, i32) {
    %c0_i32 = arith.constant 0 : i32
    %c0_i32_0 = arith.constant 0 : i32
    %c0_i32_1 = arith.constant 0 : i32
    %c0_i32_2 = arith.constant 0 : i32
    return %c0_i32, %c0_i32_0, %c0_i32_1 : i32, i32, i32
  }
  func.func @transform_7(%arg0: i32, %arg1: i32, %arg2: i32) -> (i32, i32) {
    %c0_i32 = arith.constant 0 : i32
    %c0_i32_0 = arith.constant 0 : i32
    %c0_i32_1 = arith.constant 0 : i32
    return %c0_i32, %c0_i32_0 : i32, i32
  }
  func.func @transform_8(%arg0: i32, %arg1: i32, %arg2: i32) -> (i32, i32) {
    %c0_i32 = arith.constant 0 : i32
    %c0_i32_0 = arith.constant 0 : i32
    %c0_i32_1 = arith.constant 0 : i32
    return %c0_i32, %c0_i32_0 : i32, i32
  }
  func.func @transform_9(%arg0: i32, %arg1: i32, %arg2: i32) -> (i32, i32, i32) {
    %c0_i32 = arith.constant 0 : i32
    %c0_i32_0 = arith.constant 0 : i32
    return %arg0, %arg1, %c0_i32 : i32, i32, i32
  }
}

</mosaic_0001>

<bundles_post_ra>
// kernel: tpu_custom_call.1
= control target key start
LH: loop header
LB: loop body
LE: loop exit
PB: predicated region body
PF: predicated region fallthrough
CT: control target
= control target key end

     0   :  { %s2588_s0 = inlined_call_operand.hbm [shape: bf16[2,8,32], index: 0, kind: input, shape index: {}]   ;;  %s2589_s1 = inlined_call_operand.hbm [shape: bf16[2,8,32], index: 1, kind: input, shape index: {}]   ;;  %s2590_s2 = inlined_call_operand.hbm [shape: bf16[2,8,32], index: 2, kind: input, shape index: {}]   ;;  %s2591_s3 = inlined_call_operand.hbm [shape: bf16[32,32], index: 3, kind: input, shape index: {}]   ;;  %s2592_s4 = inlined_call_operand.vmem [shape: f32[1,32], index: 4, kind: input, shape index: {}]   ;;  %s2593_s5 = inlined_call_operand.hbm [shape: bf16[2,32,32], index: 5, kind: input, shape index: {}]   ;;  %s2594_s6 = inlined_call_operand.vmem [shape: f32[2,1,32], index: 6, kind: input, shape index: {}]   ;;  %s2595_s7 = inlined_call_operand.hbm [shape: bf16[32,32], index: 7, kind: input, shape index: {}]   ;;  %s2596_s8 = inlined_call_operand.vmem [shape: f32[1,32], index: 8, kind: input, shape index: {}]   ;;  %s2597_s9 = inlined_call_operand.hbm [shape: f32[2,8,32], index: 9, kind: output, shape index: {}]  }
   0x1   :  { %2616 = sst [smem:[#allocation29_spill]] %s2589_s1 }
   0x2   :  { %2617 = sst [smem:[#allocation30_spill]] %s2591_s3 }
   0x3   :  { %2618 = sst [smem:[#allocation31_spill]] %s2593_s5 }
   0x4   :  { %2619 = sst [smem:[#allocation32_spill]] %s2597_s9 }
   0x5   :  { %14 = vsyncpa [#allocation7], 0 }
   0x6   :  { %16 = vsyncpa [#allocation7 + $0x1], 0 }
   0x7   :  { %17 = vsyncpa [#allocation10], 0 }
   0x8   :  { %19 = vsyncpa [#allocation10 + $0x1], 0 }
   0x9   :  { %20 = vsyncpa [#allocation13], 0 }
   0xa   :  { %21 = vsyncpa [#allocation16], 0 }
   0xb   :  { %22 = vsyncpa [#allocation8], 0 }
   0xc   :  { %24 = vsyncpa [#allocation8 + $0x1], 0  ;;  %s2188_s30 = smov 0   ;;  %s2190_s10 = smov 0  }
   0xd   :  { %s2192_s11 = smov 0   ;;  %s2194_s12 = smov 0  }
   0xe   :  { %s2196_s13 = smov 0   ;;  %s2198_s14 = smov 0  }
   0xf LB: > { %2620 = sst [smem:[#allocation23_spill]] %s2097_s30  ;;  %s2219_s15 = sadd.s32 4294967295, %s2117_s14   ;;  %s2117_s14 = sphi %s2198_s14, %s30_s14   ;;  %s2113_s13 = sphi %s2196_s13, %s2658_s13   ;;  %s2109_s12 = sphi %s2194_s12, %s2657_s12   ;;  %s2105_s11 = sphi %s2192_s11, %s2661_s11   ;;  %s2101_s10 = sphi %s2190_s10, %s2660_s10   ;;  %s2097_s30 = sphi %s2188_s30, %s2659_s30  }
  0x10   : > { %2621 = sst [smem:[#allocation24_spill]] %s2113_s13  ;;  %s1555_s16 = sadd.s32 4294967294, %s2117_s14  }
  0x11   : > { %2622 = sst [smem:[#allocation25_spill]] %s2117_s14  ;;  %p71_p0 = scmp.ne.s32.totalorder %s2101_s10, %s2097_s30 }
  0x12   : > { %p2610_p1 = scmp.eq.s32.totalorder %s2219_s15, 0  ;;  %p285_p3 = scmp.eq.s32.totalorder %s1555_s16, 1 }
  0x13   : > { %p1556_p5 = scmp.ge.s32.totalorder %s2117_s14, 1  ;;  %p292_p7 = scmp.lt.s32.totalorder %s2117_s14, 3 }
  0x14   : > { %p2228_p4 = por %p2610_p1, %p71_p0  ;;  %p2233_p6 = por %p285_p3, %p71_p0 }
  0x15   : > { %p2238_p8 = pnand %p1556_p5, %p292_p7  ;;  %s2119_s20 = smov [#allocation12]  }
  0x16   : > { %s2623_s17 = scalar_select %p2228_p4, 1, 0 }
  0x17   : > { %s2624_s18 = scalar_select %p2233_p6, 1, 0 }
  0x18   : > { %s2626_s19 = scalar_select %p2238_p8, 1, 0 }
  0x19   : > { %2625 = sst [smem:[#allocation26_spill]] %s2624_s18  ;;  %s304_s21 = sshll.u32 %s2119_s20, 4  ;;  %s305_s21 = int_to_ptr.vmem [resolvable:$true] %s304_s21 }
  0x1a   : > { %p1733_p9 = pneg %p2238_p8  ;;  %s49_s23 = sadd.s32 1, %s2113_s13 }
  0x1b   : > { %s1874_s24 = scalar_lea.vmem %s305_s21, 256  ;;  %p1882_p5 = scmp.lt.s32.totalorder %s305_s21, %s305_s21 }
  0x1c   : > { %p2247_p11 = pnand %p1733_p9, %p2610_p1  ;;  %p1875_p13 = scmp.ne.s32.totalorder %s305_s21, %s1874_s24 }
  0x1d   : > { %p1883_p7 = scmp.lt.s32.totalorder %s1874_s24, %s1874_s24 }
  0x1e   : > { %p2611_p12 = pneg %p2247_p11 }
  0x1f   : > { %p1884_p2 = por %p1883_p7, %p1882_p5 }
  0x20   : > { %p1877_p0 = pnand %p1875_p13, %p2611_p12 }
  0x22   : > { %p1878_p3 = pneg %p1877_p0 }
  0x24   : > { %p1885_p10 = pnand %p1884_p2, %p1878_p3 }
  0x26   : > { %1888 = shalt.err (!%p1885_p10)
}
  0x27   : > { %s2598_s25 = smov 64   ;;  %s2600_s26 = smov 4  }
  0x28   : > { %s2628_s3 = sld [smem:[#allocation30_spill]]  ;;  %p51_p2 = scmp.ge.s32.totalorder %s49_s23, 2 }
  0x29   : > { %s58_s29 = sadd.s32 1, %s2105_s11  ;;  %p65_p9 = scmp.ne.s32.totalorder %s2105_s11, %s2101_s10 }
  0x2a   : > { %p66_p10 = scmp.eq.s32.totalorder %s2117_s14, 0  ;;  %s2663_s23 = smov (%p51_p2, %s49_s23), 0 }
  0x2b   : > { %2629 = sst [smem:[#allocation27_spill]] %s2663_s23  ;;  %p2630_p0 = scmp.eq.s32.totalorder %s2219_s15, 1 }
  0x2c   : > { %p67_p13 = por %p66_p10, %p65_p9  ;;  %s53_s20 = ssub.s32 %s2113_s13, %s2663_s23 }
  0x2d   : > { %p2273_p3 = por %p2630_p0, %p65_p9  ;;  %p1760_p5 = scmp.lt.s32.totalorder %s2117_s14, 2 }
  0x2e   : > { %1736 = dma.hbm_to_vmem [thread:$0]  (!%p2247_p11), %s2628_s3, 256, %s305_s21, [#allocation13], %s2598_s25, %s2598_s25, %s2600_s26  }
  0x2f   : > { %s2631_s16 = scalar_select %p2273_p3, 1, 0 }
  0x30   : > { %p56_p7 = scmp.eq.s32.totalorder %s53_s20, 0  ;;  %s2604_s24 = sand.u32 1, %s2105_s11  }
  0x31   : > { %s2283_s21 = sshll.u32 %s2604_s24, 2  ;;  %s2286_s27 = sshll.u32 %s2113_s13, 6 }
  0x32   : > { %s2289_s28 = scalar_select %p56_p7, %s2105_s11, %s58_s29  }
  0x33   : > { %p2291_p2 = pnand %p1760_p5, %p67_p13  ;;  %s372_s26 = sand.u32 1, %s2117_s14  }
  0x34   : > { %2632 = sst [smem:[#allocation28_spill]] %s2289_s28  ;;  %s376_s18 = scalar_lea.vmem [#allocation9], %s2283_s21 }
  0x35   : > { %s2634_s1 = sld [smem:[#allocation29_spill]]  ;;  %s384_s24 = sshll.u32 %s376_s18, 4  ;;  %s385_s24 = int_to_ptr.vmem [resolvable:$true] %s384_s24 }
  0x36   : > { %s2122_s30 = smov [#allocation14]   ;;  %s2301_s9 = scalar_lea.sflag [#allocation10], %s372_s26 }
  0x37   : > { %s320_s13 = sshll.u32 %s2122_s30, 4  ;;  %p2612_p9 = pneg %p2291_p2  ;;  %s321_s13 = int_to_ptr.vmem [resolvable:$true] %s320_s13 }
  0x38   : > { %s1902_s29 = scalar_lea.vmem %s385_s24, 64  ;;  %s2123_s28 = smov [#allocation9]  }
  0x39   : > { %p1903_p10 = scmp.ne.s32.totalorder %s385_s24, %s1902_s29  ;;  %s1907_s14 = sshll.u32 %s2123_s28, 4  ;;  %s1908_s14 = int_to_ptr.vmem [resolvable:$false] %s1907_s14 }
  0x3a   : > { %s1909_s3 = scalar_lea.vmem %s1908_s14, 128  ;;  %p1910_p5 = scmp.lt.s32.totalorder %s385_s24, %s1908_s14 }
  0x3b   : > { %s382_s20 = scalar_lea.hbm %s2634_s1, %s2286_s27  ;;  %p1905_p13 = pnand %p1903_p10, %p2612_p9 }
  0x3c   : > { %p1911_p7 = scmp.lt.s32.totalorder %s1909_s3, %s1902_s29 }
  0x3d   : > { %p1906_p0 = pneg %p1905_p13 }
  0x3e   : > { %p1912_p1 = por %p1911_p7, %p1910_p5 }
  0x40   : > { %p1913_p12 = pnand %p1912_p1, %p1906_p0 }
  0x42   : > { %1916 = shalt.err (!%p1913_p12)
}
  0x43   : > { %1749 = dma.hbm_to_vmem [thread:$0]  (!%p2291_p2), %s382_s20, 64, %s385_s24, %s2301_s9  }
  0x44   : > { %s1928_s30 = scalar_lea.vmem %s321_s13, 512  ;;  %p2635_p10 = pneg %p2247_p11 }
  0x45   : > { %p1929_p6 = scmp.ne.s32.totalorder %s321_s13, %s1928_s30  ;;  %p1936_p3 = scmp.lt.s32.totalorder %s321_s13, %s321_s13 }
  0x46   : > { %p1937_p4 = scmp.lt.s32.totalorder %s1928_s30, %s1928_s30 }
  0x47   : > { %p1931_p13 = pnand %p1929_p6, %p2635_p10 }
  0x48   : > { %p1938_p8 = por %p1937_p4, %p1936_p3 }
  0x49   : > { %p1932_p9 = pneg %p1931_p13 }
  0x4b   : > { %p1939_p5 = pnand %p1938_p8, %p1932_p9 }
  0x4d   : > { %1942 = shalt.err (!%p1939_p5)
}
  0x4e   : > { %s2636_s14 = smov 4   ;;  %s2637_s18 = smov 64  }
  0x4f   : > { %s2638_s5 = sld [smem:[#allocation31_spill]]  ;;  %s2124_s24 = smov [#allocation15]  }
  0x50   : > { %s336_s28 = sshll.u32 %s2124_s24, 4  ;;  %p2639_p6 = pmov %p2635_p10  ;;  %s337_s28 = int_to_ptr.vmem [resolvable:$true] %s336_s28 }
  0x51   : > { %s1954_s20 = scalar_lea.vmem %s337_s28, 256  ;;  %p1962_p12 = scmp.lt.s32.totalorder %s337_s28, %s337_s28 }
  0x52   : > { %p1955_p1 = scmp.ne.s32.totalorder %s337_s28, %s1954_s20  ;;  %p1963_p3 = scmp.lt.s32.totalorder %s1954_s20, %s1954_s20 }
  0x54   : > { %p1957_p4 = pnand %p1955_p1, %p2639_p6  ;;  %p1964_p9 = por %p1963_p3, %p1962_p12 }
  0x55   : > { %1739 = dma.hbm_to_vmem [thread:$0]  (!%p2247_p11), %s2638_s5, 512, %s321_s13, [#allocation13], %s2637_s18, %s2637_s18, %s2636_s14  }
  0x56   : > { %p1958_p8 = pneg %p1957_p4 }
  0x58   : > { %p1965_p0 = pnand %p1964_p9, %p1958_p8 }
  0x5a   : > { %1968 = shalt.err (!%p1965_p0)
}
  0x5b   : > { %1742 = dma.hbm_to_vmem [thread:$0]  (!%p2247_p11), %s2595_s7, 256, %s337_s28, [#allocation16], %s2637_s18, %s2637_s18, %s2636_s14  }
  0x5c   : > { %s363_s23 = scalar_lea.hbm %s2588_s0, %s2286_s27  ;;  %s357_s26 = scalar_lea.vmem [#allocation6], %s2283_s21 }
  0x5d   : > { %s365_s24 = sshll.u32 %s357_s26, 4  ;;  %s2640_s20 = sand.u32 1, %s2105_s11   ;;  %s366_s24 = int_to_ptr.vmem [resolvable:$true] %s365_s24 }
  0x5e   : > { %s354_s22 = scalar_lea.sflag [#allocation7], %s2640_s20  ;;  %s1982_s1 = scalar_lea.vmem %s366_s24, 64 }
  0x5f   : > { %p1983_p7 = scmp.ne.s32.totalorder %s366_s24, %s1982_s1  ;;  %p2641_p10 = pneg %p2291_p2 }
  0x60   : > { %s2125_s13 = smov [#allocation6]  }
  0x61   : > { %p1985_p13 = pnand %p1983_p7, %p2641_p10  ;;  %s1987_s29 = sshll.u32 %s2125_s13, 4  ;;  %s1988_s29 = int_to_ptr.vmem [resolvable:$false] %s1987_s29 }
  0x62   : > { %s1989_s5 = scalar_lea.vmem %s1988_s29, 128  ;;  %p1990_p11 = scmp.lt.s32.totalorder %s366_s24, %s1988_s29 }
  0x63   : > { %p1986_p5 = pneg %p1985_p13  ;;  %p1991_p1 = scmp.lt.s32.totalorder %s1989_s5, %s1982_s1 }
  0x65   : > { %p1992_p6 = por %p1991_p1, %p1990_p11 }
  0x67   : > { %p1993_p4 = pnand %p1992_p6, %p1986_p5 }
  0x69   : > { %1996 = shalt.err (!%p1993_p4)
}
  0x6a   : > { %1746 = dma.hbm_to_vmem [thread:$0]  (!%p2291_p2), %s363_s23, 64, %s366_s24, %s354_s22  }
  0x6b   : > { %s401_s28 = scalar_lea.hbm %s2590_s2, %s2286_s27  ;;  %s395_s3 = scalar_lea.vmem [#allocation11], %s2283_s21 }
  0x6c   : > { %s403_s30 = sshll.u32 %s395_s3, 4  ;;  %p2642_p12 = pmov %p2641_p10  ;;  %s404_s30 = int_to_ptr.vmem [resolvable:$true] %s403_s30 }
  0x6d   : > { %s2010_s26 = scalar_lea.vmem %s404_s30, 64  ;;  %s2126_s1 = smov [#allocation11]  }
  0x6e   : > { %p2011_p8 = scmp.ne.s32.totalorder %s404_s30, %s2010_s26  ;;  %s2015_s5 = sshll.u32 %s2126_s1, 4  ;;  %s2016_s5 = int_to_ptr.vmem [resolvable:$false] %s2015_s5 }
  0x6f   : > { %s2017_s20 = scalar_lea.vmem %s2016_s5, 128  ;;  %p2018_p0 = scmp.lt.s32.totalorder %s404_s30, %s2016_s5 }
  0x70   : > { %p2013_p3 = pnand %p2011_p8, %p2642_p12  ;;  %p2019_p7 = scmp.lt.s32.totalorder %s2017_s20, %s2010_s26 }
  0x72   : > { %p2014_p9 = pneg %p2013_p3  ;;  %p2020_p10 = por %p2019_p7, %p2018_p0 }
  0x74   : > { %p2021_p13 = pnand %p2020_p10, %p2014_p9 }
  0x76   : > { %2024 = shalt.err (!%p2021_p13)
}
  0x77   : > { %1752 = dma.hbm_to_vmem [thread:$0]  (!%p2291_p2), %s401_s28, 64, %s404_s30, %s2301_s9  }
  0x78   : > { %p2643_p5 = scmp.ne.s32.totalorder %s2626_s19, 0 }
  0x79   : > { %s2359_s21 = sand.u32 (!%p2643_p5), 1, %s2101_s10   ;;  %p2644_p11 = scmp.ne.s32.totalorder (!%p2643_p5), %s2623_s17, 0 }
  0x7a   : > { %412 = sbr.rel (%p2643_p5) target bundleno = 1541 (0x605), region = 56  ;;  %s2362_s27 = sshll.u32 (!%p2643_p5), %s2359_s21, 2 }
  0x7b   : > { %s415_s23 = scalar_lea.sflag (!%p2643_p5), [#allocation7], %s2359_s21  ;;  %s418_s24 = scalar_lea.vmem (!%p2643_p5), [#allocation6], %s2362_s27 }
  0x7f   : > { %2076 = dma.done.wait (%p2644_p11), %s415_s23, 64  }
  0x80   : > { %2078 = vsyncadd (%p2644_p11), %s415_s23, 4294967232  ;;  %s423_s9 = sand.u32 1, %s2219_s15   ;;  %s427_s25 = scalar_lea.vmem [#allocation9], %s2362_s27 }
  0x81   : > { %s424_s19 = scalar_lea.sflag [#allocation10], %s423_s9 }
  0x82   : > { %2080 = dma.done.wait (%p2644_p11), %s424_s19, 128  }
  0x83   : > { %2082 = vsyncadd (%p2644_p11), %s424_s19, 4294967168  ;;  %s436_s22 = scalar_lea.vmem [#allocation11], %s2362_s27  ;;  %p2645_p2 = scmp.eq.s32.totalorder %s2219_s15, 0 }
  0x85   : > { %2084 = dma.done.wait (%p2645_p2), [#allocation13], 768   ;;  %p2646_p1 = pmov %p2645_p2 }
  0x87   : > { %2086 = vsyncadd (%p2646_p1), [#allocation13], 4294966528  ;;  %p2647_p6 = pmov %p2646_p1 }
  0x88   : > { %p2648_p4 = pmov %p2646_p1 }
  0x89   : > { %2088 = dma.done.wait (%p2647_p6), [#allocation16], 256  }
  0x8a   : > { %2090 = vsyncadd (%p2648_p4), [#allocation16], 4294967040  ;;  %vm522_vm0 = vcmask 261120   ;;  %v2127_v0 = vmov 0.0   ;;  %vm2128_vm1 = vmmov 0   ;;  %v1830_v1 = vld [vmem:[#allocation12 + $0x8] sm:$0xff]  }
  0x8b   : > { %1633 = vmatprep.subr.bf16.mxu0 %v2127_v0  ;;  %1641 = vmatprep.subr.bf16.mxu1 %v2127_v0  ;;  %578 = vst.msk [vmem:[#allocation5] sm:$0xff] %vm522_vm0, %v2127_v0  ;;  %v1831_v2 = vld [vmem:[#allocation14 + $0x8] sm:$0xff]   ;;  %v1832_v3 = vld [vmem:[#allocation12] sm:$0xff]   ;;  %v1833_v4 = vld [vmem:[#allocation14] sm:$0xff]   ;;  %vm567_vm2 = vcmask 257024   ;;  %vm719_vm3 = vcmask 64512  }
  0x8c   : > { %1637 = vmatprep.mubr.msk.bf16.mxu0 %vm2128_vm1, %v2127_v0  ;;  %1645 = vmatprep.mubr.msk.bf16.mxu1 %vm2128_vm1, %v2127_v0  ;;  %v498_v5 = vld [vmem:[%s418_s24] sm:$0xf]  ;;  %v579_v6 = vld [vmem:[%s427_s25] sm:$0xf]  ;;  %v1575_v7 = vld [vmem:[%s2592_s4] ss:$0 sm:$0xff] }
  0x8d   : > { %1634 = vmatpush3.bf16.msra.mxu0 %v1830_v1  ;;  %1642 = vmatpush3.bf16.msra.mxu1 %v1831_v2  ;;  %v1579_v8 = vld [vmem:[%s2594_s6] ss:$0 sm:$0xff]  ;;  %s2129_s14 = smov 120   ;;  %s2130_s18 = smov 112   ;;  %v1835_v24 = vld [vmem:[#allocation14 + $0x18] sm:$0xff]   ;;  %v1836_v25 = vld [vmem:[#allocation14 + $0x10] sm:$0xff]  }
  0x8e   : > { %1635 = vmatprep.subr.bf16.mxu0 %v2127_v0  ;;  %1643 = vmatprep.subr.bf16.mxu1 %v2127_v0  ;;  %s2131_s28 = smov 104   ;;  %v647_v26 = vld [vmem:[%s436_s22] sm:$0xf]  ;;  %vm569_vm4 = vcmask 7168   ;;  %v2132_v40 = vmov -inf   ;;  %v2133_v42 = vmov 0  }
  0x8f   : > { %570 = vst.msk [vmem:[#allocation3] sm:$0xff] %vm569_vm4, %v2132_v40  ;;  %571 = vst.msk [vmem:[#allocation3 + $0x8] sm:$0xff] %vm569_vm4, %v2132_v40  ;;  %1828 = vset.pattern.permute.xlu1 %v2133_v42  ;;  %1829 = vset.pattern.permute.xlu0 %v2133_v42  ;;  %v1584_v1 = vld [vmem:[%s2594_s6 + $0x1] ss:$0 sm:$0xff]  ;;  %vm795_vm5 = vcmask 1043456   ;;  %s2134_s26 = smov 8  }
  0x90   : > { %572 = vst.msk [vmem:[#allocation3 + $0x10] sm:$0xff] %vm569_vm4, %v2132_v40  ;;  %573 = vst.msk [vmem:[#allocation3 + $0x18] sm:$0xff] %vm569_vm4, %v2132_v40  ;;  %s2135_s1 = smov 16   ;;  %s2136_s5 = smov 24   ;;  %vm990_vm6 = vcmask 130112   ;;  %vm1129_vm7 = vcmask 195712  }
  0x91   : > { %1636 = vmatpush3.bf16.msra.mxu0 %v1832_v3  ;;  %1644 = vmatpush3.bf16.msra.mxu1 %v1833_v4  ;;  %574 = vst.msk [vmem:[#allocation4] sm:$0xff] %vm569_vm4, %v2127_v0  ;;  %575 = vst.msk [vmem:[#allocation4 + $0x8] sm:$0xff] %vm569_vm4, %v2127_v0  ;;  %vm1268_vm8 = vcmask 261312   ;;  %s1574_s20 = sshll.u32 %s2359_s21, 3  ;;  %s1602_s24 = sshll.u32 %s2109_s12, 7 }
  0x92   : > { %1649 = vmatprep.subr.bf16.mxu0 %v2127_v0  ;;  %1657 = vmatprep.subr.bf16.mxu1 %v2127_v0  ;;  %576 = vst.msk [vmem:[#allocation4 + $0x10] sm:$0xff] %vm569_vm4, %v2127_v0  ;;  %577 = vst.msk [vmem:[#allocation4 + $0x18] sm:$0xff] %vm569_vm4, %v2127_v0  ;;  %s492_s9 = scalar_lea.vmem [#allocation17], %s1574_s20  ;;  %s2649_s15 = sld [smem:[#allocation32_spill]] }
  0x93   : > { %s1397_s19 = sshll.u32 %s492_s9, 4  ;;  %s1383_s13 = scalar_lea.sflag [#allocation8], %s2359_s21  ;;  %s2541_s19 = int_to_ptr.vmem [resolvable:$true] %s1397_s19 }
  0x94   : > { %1638 = vmatmul.mubr.msk.bf16.vlgmr.msra.gmra.mxu0 %vm522_vm0, %v498_v5  ;;  %1646 = vmatmul.mubr.msk.bf16.vlgmr.msra.gmra.mxu1 %vm522_vm0, %v579_v6  ;;  %s2025_s12 = scalar_lea.vmem %s2541_s19, 128  ;;  %p2650_p12 = scmp.ne.s32.totalorder %s2631_s16, 0 }
  0x95   : > { %1653 = vmatprep.mubr.msk.bf16.mxu0 %vm2128_vm1, %v2127_v0  ;;  %1659 = vmatprep.mubr.msk.bf16.mxu1 %vm2128_vm1, %v2127_v0  ;;  %p2026_p8 = scmp.ne.s32.totalorder %s2541_s19, %s2025_s12  ;;  %s2137_s29 = smov [#allocation17]  }
  0x96   : > { %1650 = vmatpush3.bf16.msra.mxu0 %v1835_v24  ;;  %v2470_v57 = vld [vmem:[#allocation3] sm:$0xff] }
  0x97   : > { %1651 = vmatprep.subr.bf16.mxu0 %v2127_v0  ;;  %p2027_p3 = pnand %p2026_p8, %p2650_p12 }
  0x98   : > { %s2539_s17 = scalar_lea.hbm %s2649_s15, %s1602_s24 }
  0x99   : > { %p2028_p9 = pneg %p2027_p3 }
  0x9a   : > { %1652 = vmatpush3.bf16.msra.mxu0 %v1836_v25 }
  0x9b   : > { %1663 = vmatprep.subr.bf16.mxu0 %v2127_v0 }
  0x9d   : > { %1654 = vmatmul.mubr.msk.bf16.vlgmr.msra.gmra.mxu0 %vm522_vm0, %v647_v26 }
  0x9e   : > { %1665 = vmatprep.mubr.msk.bf16.mxu0 %vm2128_vm1, %v2127_v0 }
 0x154   : > { %v560_v9 = vpop.f32.mrf.mxu0  ;;  %v641_v11 = vpop.f32.mrf.mxu1 }
 0x155   : > { %v561_v10 = vadd.f32 %v1575_v7, %v560_v9  ;;  %v642_v12 = vadd.f32 %v1579_v8, %v641_v11  ;;  %v903_v7 = vld [vmem:[#allocation3 + $0x8] sm:$0xff]  ;;  %v1043_v11 = vld [vmem:[#allocation3 + $0x10] sm:$0xff] }
 0x156   : > { %v1639_v13 = vpop.f32.mrf.mxu0  ;;  %v1647_v15 = vpop.f32.mrf.mxu1 }
 0x157   : > { %v566_v14 = vpack.c.bf16 %v561_v10, %v561_v10  ;;  %v716_v16 = vpack.c.bf16 %v642_v12, %v642_v12 }
 0x158   : > { %v563_v17 = vpop.f32.mrf.mxu0  ;;  %v644_v18 = vpop.f32.mrf.mxu1 }
 0x159   : > { %568 = vst.msk [vmem:[#allocation2] sm:$0xf] %vm567_vm2, %v566_v14  ;;  %854 = vrot.lane.b32.xlu0 %v716_v16, %s2129_s14  ;;  %v724_v20 = vsel %vm719_vm3, %v716_v16, 0  ;;  %994 = vrot.lane.b32.xlu1 %v716_v16, %s2130_s18  ;;  %v1182_v18 = vld [vmem:[#allocation3 + $0x18] sm:$0xff] }
 0x15a   : > { %v1640_v19 = vpop.f32.mrf.mxu0  ;;  %v1648_v21 = vpop.f32.mrf.mxu1  ;;  %1658 = vmatpush3.bf16.xpose.msra.mxu1 %v724_v20 }
 0x15b   : > { %1669 = vmatprep.subr.bf16.mxu1 %v2127_v0 }
 0x15d   : > { %v710_v59 = vpop.f32.mrf.mxu0 }
 0x15e   : > { %v711_v4 = vadd.f32 %v1584_v1, %v710_v59 }
 0x15f   : > { %v1655_v62 = vpop.f32.mrf.mxu0 }
 0x160   : > { %v718_v22 = vld [vmem:[#allocation2] sm:$0xf]  ;;  %v717_v5 = vpack.c.bf16 %v711_v4, %v711_v4  ;;  %v920_v4 = vld [vmem:[#allocation4 + $0x8] sm:$0xff] }
 0x161   : > { %v1590_v23 = vcombine.low %v718_v22, %v718_v22  ;;  %1660 = vmatmul.mubr.msk.bf16.vlgmr.msra.gmra.mxu1 %vm719_vm3, %v718_v22  ;;  %v713_v2 = vpop.f32.mrf.mxu0 }
 0x162   : > { %1671 = vmatprep.mubr.msk.bf16.mxu1 %vm2128_vm1, %v2127_v0  ;;  %v797_v6 = vsel %vm795_vm5, %v717_v5, 0 }
 0x163   : > { %992 = vrot.lane.b32.xlu1 %v1590_v23, %s2130_s18  ;;  %851 = vrot.lane.b32.xlu0 %v1590_v23, %s2129_s14  ;;  %v1656_v3 = vpop.f32.mrf.mxu0 }
 0x164   : > { %1664 = vmatpush3.bf16.msra.mxu0 %v797_v6 }
 0x165   : > { %1675 = vmatprep.subr.bf16.mxu0 %v2127_v0 }
 0x167   : > { %1131 = vrot.lane.b32.xlu1 %v1590_v23, %s2131_s28  ;;  %1133 = vrot.lane.b32.xlu0 %v716_v16, %s2131_s28 }
 0x1cb   : > { %v855_v27 = vpop.permute.xlu0 %854  ;;  %v995_v29 = vpop.permute.xlu1 %994 }
 0x1cc   : > { %v860_v28 = vsel %vm719_vm3, %v855_v27, 0  ;;  %v1000_v31 = vsel %vm719_vm3, %v995_v29, 0 }
 0x1cd   : > { %1670 = vmatpush3.bf16.xpose.msra.mxu1 %v860_v28 }
 0x1ce   : > { %1681 = vmatprep.subr.bf16.mxu1 %v2127_v0 }
 0x1d5   : > { %v852_v30 = vpop.permute.xlu0 %851  ;;  %v993_v33 = vpop.permute.xlu1 %992 }
 0x1d6   : > { %1672 = vmatmul.mubr.msk.bf16.vlgmr.msra.gmra.mxu1 %vm719_vm3, %v852_v30 }
 0x1d7   : > { %1682 = vmatpush3.bf16.xpose.msra.mxu1 %v1000_v31  ;;  %1683 = vmatprep.mubr.msk.bf16.mxu1 %vm2128_vm1, %v2127_v0 }
 0x1d8   : > { %1693 = vmatprep.subr.bf16.mxu1 %v2127_v0 }
 0x1d9   : > { %v1134_v32 = vpop.permute.xlu0 %1133  ;;  %v1132_v35 = vpop.permute.xlu1 %1131 }
 0x1da   : > { %v1139_v34 = vsel %vm719_vm3, %v1134_v32, 0 }
 0x1de   : > { %1684 = vmatmul.mubr.msk.bf16.vlgmr.msra.gmra.mxu1 %vm719_vm3, %v993_v33 }
 0x1df   : > { %1694 = vmatpush3.bf16.xpose.msra.mxu1 %v1139_v34  ;;  %1695 = vmatprep.mubr.msk.bf16.mxu1 %vm2128_vm1, %v2127_v0 }
 0x1e0   : > { %1705 = vmatprep.subr.bf16.mxu1 %v2127_v0 }
 0x1e6   : > { %1696 = vmatmul.mubr.msk.bf16.vlgmr.msra.gmra.mxu1 %vm719_vm3, %v1132_v35 }
 0x1e7   : > { %1709 = vmatprep.mubr.msk.bf16.mxu1 %vm2128_vm1, %v2127_v0 }
 0x221   : > { %v2442_v36 = vpop.f32.mrf.mxu1 }
 0x222   : > { %v767_v37 = vsel %vm719_vm3, %v2442_v36, -inf }
 0x223   : > { %768 = vmax.xlane.f32.xlu0 %v767_v37  ;;  %v1661_v38 = vpop.f32.mrf.mxu1 }
 0x225   : > { %v763_v39 = vpop.f32.mrf.mxu1 }
 0x227   : > { %v1662_v41 = vpop.f32.mrf.mxu1 }
 0x296   : > { %v2458_v43 = vpop.f32.mrf.mxu1 }
 0x297   : > { %v904_v44 = vsel %vm719_vm3, %v2458_v43, -inf }
 0x298   : > { %905 = vmax.xlane.f32.xlu1 %v904_v44  ;;  %v1673_v45 = vpop.f32.mrf.mxu1 }
 0x29a   : > { %v899_v46 = vpop.f32.mrf.mxu1 }
 0x29c   : > { %v1674_v47 = vpop.f32.mrf.mxu1 }
 0x29e   : > { %v2462_v48 = vpop.f32.mrf.mxu1 }
 0x29f   : > { %v1044_v49 = vsel %vm719_vm3, %v2462_v48, -inf }
 0x2a0   : > { %1045 = vmax.xlane.f32.xlu0 %v1044_v49  ;;  %v1685_v50 = vpop.f32.mrf.mxu1 }
 0x2a2   : > { %v1039_v51 = vpop.f32.mrf.mxu1 }
 0x2a4   : > { %v1686_v52 = vpop.f32.mrf.mxu1 }
 0x2a6   : > { %v2466_v53 = vpop.f32.mrf.mxu1 }
 0x2a7   : > { %v1183_v54 = vsel %vm719_vm3, %v2466_v53, -inf }
 0x2a8   : > { %1184 = vmax.xlane.f32.xlu0 %v1183_v54  ;;  %v1697_v55 = vpop.f32.mrf.mxu1 }
 0x2aa   : > { %v1178_v56 = vpop.f32.mrf.mxu1 }
 0x2ab   : > { %v782_v56 = vld [vmem:[#allocation4] sm:$0xff] }
 0x2ac   : > { %v1698_v58 = vpop.f32.mrf.mxu1  ;;  %v769_v60 = vpop.xlane.xlu0 %768 }
 0x2ad   : > { %v2473_v61 = vmax.f32 %v2470_v57, %v769_v60 }
 0x2af   : > { %v771_v63 = vsub.f32 %v2470_v57, %v2473_v61  ;;  %790 = vst.msk [vmem:[#allocation3] sm:$0xff] %vm569_vm4, %v2473_v61  ;;  %776 = vperm.xlu1 %1828, %v2473_v61  }
 0x2b1   : > { %v772_v41 = vmul.f32 1.442695, %v771_v63 }
 0x321   : > { %v906_v8 = vpop.xlane.xlu1 %905 }
 0x322   : > { %v907_v9 = vmax.f32 %v903_v7, %v906_v8  ;;  %v1060_v8 = vld [vmem:[#allocation4 + $0x10] sm:$0xff] }
 0x324   : > { %v908_v10 = vsub.f32 %v903_v7, %v907_v9  ;;  %927 = vst.msk [vmem:[#allocation3 + $0x8] sm:$0xff] %vm569_vm4, %v907_v9  ;;  %913 = vperm.xlu0 %1829, %v907_v9   ;;  %v839_v9 = vld [vmem:[#allocation5] sm:$0xff] }
 0x326   : > { %v909_v44 = vmul.f32 1.442695, %v908_v10 }
 0x329   : > { %v1046_v12 = vpop.xlane.xlu0 %1045 }
 0x32a   : > { %v1047_v13 = vmax.f32 %v1043_v11, %v1046_v12  ;;  %v777_v14 = vpop.permute.xlu1 %776 }
 0x32b   : > { %v779_v16 = vsub.f32 %v2442_v36, %v777_v14 }
 0x32c   : > { %v1048_v15 = vsub.f32 %v1043_v11, %v1047_v13  ;;  %1067 = vst.msk [vmem:[#allocation3 + $0x10] sm:$0xff] %vm569_vm4, %v1047_v13  ;;  %1053 = vperm.xlu1 %1828, %v1047_v13  }
 0x32d   : > { %v780_v17 = vmul.f32 1.442695, %v779_v16 }
 0x32e   : > { %v1049_v47 = vmul.f32 1.442695, %v1048_v15 }
 0x32f   : > { %1839 = vpow2.f32 %v780_v17 }
 0x330   : > { %930 = vrot.lane.b32.xlu1 %v717_v5, %s2129_s14  ;;  %s2029_s14 = sshll.u32 %s2137_s29, 4  ;;  %s2030_s14 = int_to_ptr.vmem [resolvable:$false] %s2029_s14 }
 0x331   : > { %v1185_v19 = vpop.xlane.xlu0 %1184  ;;  %p2032_p0 = scmp.lt.s32.totalorder %s2541_s19, %s2030_s14 }
 0x332   : > { %v1186_v20 = vmax.f32 %v1182_v18, %v1185_v19 }
 0x334   : > { %v1187_v21 = vsub.f32 %v1182_v18, %v1186_v20  ;;  %1206 = vst.msk [vmem:[#allocation3 + $0x18] sm:$0xff] %vm569_vm4, %v1186_v20  ;;  %1192 = vperm.xlu1 %1828, %v1186_v20   ;;  %v1199_v20 = vld [vmem:[#allocation4 + $0x18] sm:$0xff] }
 0x336   : > { %v1188_v49 = vmul.f32 1.442695, %v1187_v21 }
 0x338   : > { %1069 = vrot.lane.b32.xlu1 %v717_v5, %s2130_s18  ;;  %s2031_s18 = scalar_lea.vmem %s2030_s14, 256 }
 0x339   : > { %p2033_p7 = scmp.lt.s32.totalorder %s2031_s18, %s2025_s12 }
 0x33b   : > { %p2034_p10 = por %p2033_p7, %p2032_p0 }
 0x33c   : > { %1208 = vrot.lane.b32.xlu1 %v717_v5, %s2131_s28  ;;  %v1840_v22 = vpop.eup %1839 }
 0x33d   : > { %v791_v23 = vpack.c.bf16 %v1840_v22, %v1840_v22  ;;  %v784_v24 = vsel %vm719_vm3, %v1840_v22, 0.0  ;;  %p2035_p13 = pnand %p2034_p10, %p2028_p9 }
 0x33f   : > { %1666 = vmatmul.mubr.msk.bf16.vlgmr.msra.gmra.mxu0 %vm719_vm3, %v791_v23 }
 0x340   : > { %1677 = vmatprep.mubr.msk.bf16.mxu0 %vm2128_vm1, %v2127_v0 }
 0x360   : > { %785 = vadd.xlane.f32.xlu1 %v784_v24 }
 0x39f   : > { %v914_v25 = vpop.permute.xlu0 %913 }
 0x3a0   : > { %v916_v26 = vsub.f32 %v2458_v43, %v914_v25 }
 0x3a2   : > { %v917_v27 = vmul.f32 1.442695, %v916_v26 }
 0x3a4   : > { %1841 = vpow2.f32 %v917_v27 }
 0x3a7   : > { %v1054_v28 = vpop.permute.xlu1 %1053 }
 0x3a8   : > { %v1056_v29 = vsub.f32 %v2462_v48, %v1054_v28 }
 0x3aa   : > { %v1057_v30 = vmul.f32 1.442695, %v1056_v29 }
 0x3ab   : > { %v931_v31 = vpop.permute.xlu1 %930 }
 0x3ac   : > { %1843 = vpow2.f32 %v1057_v30  ;;  %v936_v32 = vsel %vm795_vm5, %v931_v31, 0 }
 0x3ad   : > { %1676 = vmatpush3.bf16.msra.mxu0 %v936_v32 }
 0x3ae   : > { %1687 = vmatprep.subr.bf16.mxu0 %v2127_v0 }
 0x3af   : > { %v1193_v33 = vpop.permute.xlu1 %1192 }
 0x3b0   : > { %v1195_v34 = vsub.f32 %v2466_v53, %v1193_v33 }
 0x3b1   : > { %v1842_v35 = vpop.eup %1841 }
 0x3b2   : > { %v1196_v36 = vmul.f32 1.442695, %v1195_v34  ;;  %v922_v37 = vsel %vm719_vm3, %v1842_v35, 0.0  ;;  %v928_v38 = vpack.c.bf16 %v1842_v35, %v1842_v35 }
 0x3b3   : > { %923 = vadd.xlane.f32.xlu0 %v922_v37  ;;  %v1070_v39 = vpop.permute.xlu1 %1069 }
 0x3b4   : > { %1845 = vpow2.f32 %v1196_v36  ;;  %v1075_v40 = vsel %vm795_vm5, %v1070_v39, 0  ;;  %1678 = vmatmul.mubr.msk.bf16.vlgmr.msra.gmra.mxu0 %vm719_vm3, %v928_v38  ;;  %v1837_v39 = vld [vmem:[#allocation15 + $0x8] sm:$0xff]  }
 0x3b5   : > { %1688 = vmatpush3.bf16.msra.mxu0 %v1075_v40  ;;  %1689 = vmatprep.mubr.msk.bf16.mxu0 %vm2128_vm1, %v2127_v0  ;;  %1847 = vpow2.f32 %v772_v41  ;;  %v1838_v40 = vld [vmem:[#allocation15] sm:$0xff]  }
 0x3b6   : > { %1699 = vmatprep.subr.bf16.mxu0 %v2127_v0  ;;  %1849 = vpow2.f32 %v909_v44  ;;  %1706 = vmatpush3.bf16.msra.mxu1 %v1837_v39 }
 0x3b7   : > { %v1209_v43 = vpop.permute.xlu1 %1208  ;;  %1851 = vpow2.f32 %v1049_v47  ;;  %1707 = vmatprep.subr.bf16.mxu1 %v2127_v0 }
 0x3b8   : > { %v1214_v48 = vsel %vm795_vm5, %v1209_v43, 0  ;;  %1853 = vpow2.f32 %v1188_v49 }
 0x3b9   : > { %v1844_v42 = vpop.eup %1843 }
 0x3ba   : > { %v1062_v45 = vsel %vm719_vm3, %v1844_v42, 0.0  ;;  %v1068_v46 = vpack.c.bf16 %v1844_v42, %v1844_v42  ;;  %1708 = vmatpush3.bf16.msra.mxu1 %v1838_v40 }
 0x3bb   : > { %1063 = vadd.xlane.f32.xlu1 %v1062_v45 }
 0x3bc   : > { %1690 = vmatmul.mubr.msk.bf16.vlgmr.msra.gmra.mxu0 %vm719_vm3, %v1068_v46 }
 0x3bd   : > { %1700 = vmatpush3.bf16.msra.mxu0 %v1214_v48  ;;  %1701 = vmatprep.mubr.msk.bf16.mxu0 %vm2128_vm1, %v2127_v0 }
 0x3c1   : > { %v1846_v50 = vpop.eup %1845 }
 0x3c2   : > { %v1207_v51 = vpack.c.bf16 %v1846_v50, %v1846_v50  ;;  %v1848_v52 = vpop.eup %1847  ;;  %v1201_v60 = vsel %vm719_vm3, %v1846_v50, 0.0 }
 0x3c3   : > { %v1850_v53 = vpop.eup %1849  ;;  %v783_v57 = vmul.f32 %v1848_v52, %v782_v56 }
 0x3c4   : > { %1702 = vmatmul.mubr.msk.bf16.vlgmr.msra.gmra.mxu0 %vm719_vm3, %v1207_v51  ;;  %v1852_v54 = vpop.eup %1851  ;;  %v921_v5 = vmul.f32 %v1850_v53, %v920_v4 }
 0x3c5   : > { %v1854_v55 = vpop.eup %1853  ;;  %v1061_v10 = vmul.f32 %v1852_v54, %v1060_v8 }
 0x3c6   : > { %v1200_v23 = vmul.f32 %v1854_v55, %v1199_v20 }
 0x3c9   : > { %842 = vperm.xlu0 %1829, %v1848_v52  }
 0x3cc   : > { %981 = vperm.xlu1 %1828, %v1850_v53  }
 0x3cd   : > { %1120 = vperm.xlu0 %1829, %v1852_v54  }
 0x3d1   : > { %1259 = vperm.xlu0 %1829, %v1854_v55  }
 0x3e9   : > { %v786_v58 = vpop.xlane.xlu1 %785 }
 0x3ea   : > { %v787_v59 = vadd.f32 %v786_v58, %v783_v57 }
 0x3ec   : > { %789 = vst.msk [vmem:[#allocation4] sm:$0xff] %vm569_vm4, %v787_v59 }
 0x3f0   : > { %1202 = vadd.xlane.f32.xlu1 %v1201_v60 }
 0x3f3   : > { %v1273_v61 = vld [vmem:[#allocation4] sm:$0xff] }
 0x3f4   : > { %1855 = vrcp.f32 %v1273_v61 }
 0x3ff   : > { %v833_v63 = vpop.f32.mrf.mxu0 }
 0x401   : > { %v1856_v62 = vpop.eup %1855  ;;  %v1667_v1 = vpop.f32.mrf.mxu0 }
 0x402   : > { %1278 = vperm.xlu0 %1829, %v1856_v62  }
 0x403   : > { %v836_v2 = vpop.f32.mrf.mxu0 }
 0x405   : > { %v1668_v3 = vpop.f32.mrf.mxu0 }
 0x43c   : > { %v924_v6 = vpop.xlane.xlu0 %923 }
 0x43d   : > { %v925_v7 = vadd.f32 %v924_v6, %v921_v5  ;;  %v1597_v5 = vld [vmem:[%s2596_s8] ss:$0 sm:$0xff] }
 0x43f   : > { %926 = vst.msk [vmem:[#allocation4 + $0x8] sm:$0xff] %vm569_vm4, %v925_v7 }
 0x444   : > { %v843_v11 = vpop.permute.xlu0 %842  ;;  %v1064_v12 = vpop.xlane.xlu1 %1063 }
 0x445   : > { %v845_v13 = vmul.f32 %v843_v11, %v839_v9  ;;  %v1065_v14 = vadd.f32 %v1064_v12, %v1061_v10 }
 0x446   : > { %v1283_v24 = vld [vmem:[#allocation4 + $0x8] sm:$0xff] }
 0x447   : > { %v846_v15 = vadd.f32 %v845_v13, %v833_v63  ;;  %1066 = vst.msk [vmem:[#allocation4 + $0x10] sm:$0xff] %vm569_vm4, %v1065_v14 }
 0x448   : > { %v982_v19 = vpop.permute.xlu1 %981  ;;  %v1121_v45 = vpop.permute.xlu0 %1120 }
 0x449   : > { %847 = vst.msk [vmem:[#allocation5] sm:$0xff] %vm719_vm3, %v846_v15 }
 0x44c   : > { %v1260_v50 = vpop.permute.xlu0 %1259 }
 0x44e   : > { %v1293_v16 = vld [vmem:[#allocation4 + $0x10] sm:$0xff] }
 0x44f   : > { %1857 = vrcp.f32 %v1293_v16 }
 0x450   : > { %1859 = vrcp.f32 %v1283_v24  ;;  %v978_v41 = vld [vmem:[#allocation5] sm:$0xff] }
 0x451   : > { %v984_v42 = vmul.f32 %v982_v19, %v978_v41 }
 0x45c   : > { %v1858_v17 = vpop.eup %1857 }
 0x45d   : > { %1298 = vperm.xlu0 %1829, %v1858_v17   ;;  %v1860_v35 = vpop.eup %1859 }
 0x474   : > { %v972_v18 = vpop.f32.mrf.mxu0 }
 0x475   : > { %986 = vrot.lane.b32.xlu1 %v972_v18, %s2134_s26 }
 0x476   : > { %v1679_v21 = vpop.f32.mrf.mxu0 }
 0x478   : > { %v975_v22 = vpop.f32.mrf.mxu0 }
 0x479   : > { %v1203_v25 = vpop.xlane.xlu1 %1202 }
 0x47a   : > { %v1204_v26 = vadd.f32 %v1203_v25, %v1200_v23  ;;  %v1680_v27 = vpop.f32.mrf.mxu0 }
 0x47c   : > { %1205 = vst.msk [vmem:[#allocation4 + $0x18] sm:$0xff] %vm569_vm4, %v1204_v26  ;;  %v1111_v28 = vpop.f32.mrf.mxu0 }
 0x47d   : > { %1125 = vrot.lane.b32.xlu1 %v1111_v28, %s2135_s1  ;;  %v1279_v54 = vpop.permute.xlu0 %1278 }
 0x47e   : > { %v1691_v29 = vpop.f32.mrf.mxu0 }
 0x480   : > { %v1114_v30 = vpop.f32.mrf.mxu0 }
 0x482   : > { %v1692_v31 = vpop.f32.mrf.mxu0 }
 0x483   : > { %v1303_v32 = vld [vmem:[#allocation4 + $0x18] sm:$0xff] }
 0x484   : > { %v1250_v33 = vpop.f32.mrf.mxu0  ;;  %1861 = vrcp.f32 %v1303_v32 }
 0x485   : > { %1264 = vrot.lane.b32.xlu1 %v1250_v33, %s2136_s5 }
 0x486   : > { %v1703_v34 = vpop.f32.mrf.mxu0 }
 0x488   : > { %v1253_v36 = vpop.f32.mrf.mxu0 }
 0x489   : > { %1288 = vperm.xlu1 %1828, %v1860_v35  }
 0x48a   : > { %v1704_v37 = vpop.f32.mrf.mxu0 }
 0x491   : > { %v1862_v38 = vpop.eup %1861 }
 0x492   : > { %1308 = vperm.xlu1 %1828, %v1862_v38  }
 0x4d8   : > { %v1299_v60 = vpop.permute.xlu0 %1298 }
 0x4e7   : > { %v987_v43 = vpop.permute.xlu1 %986 }
 0x4e8   : > { %v989_v44 = vadd.f32 %v987_v43, %v984_v42 }
 0x4ea   : > { %991 = vst.msk [vmem:[#allocation5] sm:$0xff] %vm990_vm6, %v989_v44 }
 0x4ef   : > { %v1126_v48 = vpop.permute.xlu1 %1125 }
 0x4f1   : > { %v1117_v46 = vld [vmem:[#allocation5] sm:$0xff] }
 0x4f2   : > { %v1123_v47 = vmul.f32 %v1121_v45, %v1117_v46 }
 0x4f4   : > { %v1128_v49 = vadd.f32 %v1126_v48, %v1123_v47 }
 0x4f6   : > { %1130 = vst.msk [vmem:[#allocation5] sm:$0xff] %vm1129_vm7, %v1128_v49 }
 0x4f7   : > { %v1265_v0 = vpop.permute.xlu1 %1264 }
 0x4fd   : > { %v1256_v51 = vld [vmem:[#allocation5] sm:$0xff] }
 0x4fe   : > { %v1262_v52 = vmul.f32 %v1260_v50, %v1256_v51 }
 0x500   : > { %v1267_v53 = vadd.f32 %v1265_v0, %v1262_v52 }
 0x502   : > { %1269 = vst.msk [vmem:[#allocation5] sm:$0xff] %vm1268_vm8, %v1267_v53 }
 0x504   : > { %v1289_v58 = vpop.permute.xlu1 %1288 }
 0x509   : > { %v1275_v55 = vld [vmem:[#allocation5] sm:$0xff] }
 0x50a   : > { %v1281_v56 = vmul.f32 %v1279_v54, %v1275_v55 }
 0x50c   : > { %1282 = vst.msk [vmem:[#allocation5] sm:$0xff] %vm719_vm3, %v1281_v56 }
 0x50d   : > { %v1309_v1 = vpop.permute.xlu1 %1308 }
 0x513   : > { %v1285_v57 = vld [vmem:[#allocation5] sm:$0xff] }
 0x514   : > { %v1291_v59 = vmul.f32 %v1289_v58, %v1285_v57 }
 0x516   : > { %1292 = vst.msk [vmem:[#allocation5] sm:$0xff] %vm990_vm6, %v1291_v59 }
 0x51d   : > { %v1295_v61 = vld [vmem:[#allocation5] sm:$0xff] }
 0x51e   : > { %v1301_v62 = vmul.f32 %v1299_v60, %v1295_v61 }
 0x520   : > { %1302 = vst.msk [vmem:[#allocation5] sm:$0xff] %vm1129_vm7, %v1301_v62 }
 0x527   : > { %v1305_v63 = vld [vmem:[#allocation5] sm:$0xff] }
 0x528   : > { %v1311_v2 = vmul.f32 %v1309_v1, %v1305_v63 }
 0x52a   : > { %1312 = vst.msk [vmem:[#allocation5] sm:$0xff] %vm1268_vm8, %v1311_v2 }
 0x531   : > { %v1313_v3 = vld [vmem:[#allocation5] sm:$0xff] }
 0x532   : > { %v1314_v4 = vpack.c.bf16 %v1313_v3, %v1313_v3 }
 0x534   : > { %1710 = vmatmul.mubr.msk.bf16.vlgmr.msra.gmra.mxu1 %vm522_vm0, %v1314_v4 }
 0x5f4   : > { %v1375_v6 = vpop.f32.mrf.mxu1 }
 0x5f5   : > { %v1376_v7 = vadd.f32 %v1597_v5, %v1375_v6 }
 0x5f6   : > { %v1711_v8 = vpop.f32.mrf.mxu1 }
 0x5f7   : > { %1381 = vst.msk [vmem:[%s492_s9] sm:$0xff] %vm522_vm0, %v1376_v7 }
 0x5f8   : > { %v1378_v9 = vpop.f32.mrf.mxu1 }
 0x5f9   : > { %2038 = shalt.err (!%p2035_p13)
}
 0x5fa   : > { %s2039_s28 = scalar_lea.hbm %s2539_s17, 128  ;;  %s2043_s30 = scalar_lea.hbm %s2649_s15, 256 }
 0x5fb   : > { %p2040_p5 = scmp.ne.s32.totalorder %s2539_s17, %s2039_s28  ;;  %p2044_p1 = scmp.lt.s32.totalorder %s2539_s17, %s2649_s15 }
 0x5fc   : > { %p2045_p6 = scmp.lt.s32.totalorder %s2043_s30, %s2039_s28 }
 0x5fd   : > { %p2041_p11 = pnand %p2040_p5, %p2650_p12 }
 0x5fe   : > { %p2046_p4 = por %p2045_p6, %p2044_p1 }
 0x5ff   : > { %p2042_p2 = pneg %p2041_p11 }
 0x601   : > { %p2047_p8 = pnand %p2046_p4, %p2042_p2 }
 0x603   : > { %2050 = shalt.err (!%p2047_p8)
}
 0x604   : > { %1731 = dma.vmem_to_hbm [thread:$0]  (%p2650_p12), %s2541_s19, 128, %s2539_s17, %s1383_s13   ;;  %v1712_v10 = vpop.f32.mrf.mxu1 }
 0x605 PF: > { %s2651_s5 = sld [smem:[#allocation23_spill]] }
 0x606   : > { %s2652_s20 = sld [smem:[#allocation26_spill]] }
 0x607   : > { %s2653_s27 = sld [smem:[#allocation25_spill]] }
 0x60b   : > { %s1409_s23 = sand.u32 1, %s2651_s5  }
 0x60c   : > { %p2654_p3 = scmp.ne.s32.totalorder %s2652_s20, 0  ;;  %s1410_s24 = scalar_lea.sflag [#allocation8], %s1409_s23 }
 0x60d   : > { %p2655_p9 = scmp.ge.s32.totalorder %s2653_s27, 2 }
 0x60f   : > { %p1754_p0 = pnand %p2655_p9, %p2654_p3 }
 0x611   : > { %p1755_p7 = pneg %p1754_p0 }
 0x613   : > { %2092 = dma.done.wait (%p1755_p7), %s1410_s24, 128  }
 0x614   : > { %2094 = vsyncadd (%p1755_p7), %s1410_s24, 4294967168  ;;  %s30_s14 = sadd.s32 1, %s2653_s27   ;;  %s2656_s16 = sld [smem:[#allocation28_spill]] }
 0x615   : > { %p27_p10 = scmp.ge.s32.totalorder %s30_s14, 4   ;;  %s2657_s12 = sld [smem:[#allocation24_spill]] }
 0x616   : > { %s2658_s13 = sld [smem:[#allocation27_spill]]  ;;  %s2659_s30 = smov %s2101_s10 }
 0x617   : > { %s2660_s10 = smov %s2105_s11  ;;  %29 = sbr.rel (!%p27_p10) target bundleno = 15 (0xf), region = 153 }
 0x61a   : > { %s2661_s11 = smov %s2656_s16 }
 0x61c   :  { %1415 = vsyncpa [#allocation7], 1 }
 0x61d   :  { %1417 = vsyncpa [#allocation7 + $0x1], 1 }
 0x61e   :  { %1418 = vsyncpa [#allocation10], 1 }
 0x61f   :  { %1420 = vsyncpa [#allocation10 + $0x1], 1 }
 0x620   :  { %1421 = vsyncpa [#allocation13], 1 }
 0x621   :  { %1422 = vsyncpa [#allocation16], 1 }
 0x622   :  { %1423 = vsyncpa [#allocation8], 1 }
 0x623   :  { %1425 = vsyncpa [#allocation8 + $0x1], 1 }

</bundles_post_ra>
